<compile_context>
chip_gen: v5e
topology: v5e:2x2
jax: 0.10.0
libtpu: 0.0.40
codegen_flags: <defaults>
</compile_context>

<pallas_src>
import numpy as np

import jax
import jax.numpy as jnp
from jax.experimental import pallas as pl
from jax.experimental.pallas import tpu as pltpu

_MIB = 1024 * 1024


def _round_up(x, m):
    return ((x + m - 1) // m) * m


def _vmem_capacity_bytes():
    """Physical VMEM per TensorCore; conservative (v7x-sized) fallback."""
    try:
        info = pltpu.get_tpu_info()
        cap = int(getattr(info, "vmem_capacity_bytes", 0))
        if cap > 0:
            return cap
    except Exception:
        pass
    return 64 * _MIB


def _estimate_vmem_bytes(tile_n, c_in, hidden, x_bytes, w_bytes, out_bytes):
    """Conservative per-step VMEM footprint (pipeline double buffers included)."""
    x_in = 2 * tile_n * c_in * x_bytes          # input tile, double-buffered
    out = 2 * tile_n * c_in * out_bytes         # output tile, double-buffered
    wts = 2 * 2 * c_in * hidden * w_bytes       # W1^T + W2^T, 2 buffers each
    h32 = tile_n * hidden * 4                   # f32 bottleneck intermediate
    y32 = tile_n * c_in * 4                     # f32 result before final cast
    return x_in + out + wts + h32 + y32


def _choose_tile_n(n, c_in, hidden, x_bytes, w_bytes, out_bytes, budget):
    sub = 16 if min(x_bytes, out_bytes) < 4 else 8     # sublane packing
    n_aligned = _round_up(max(n, 1), sub)
    candidates = [t for t in (4096, 2048, 1024, 512, 256, 128, 64, 32, 16, 8)
                  if t % sub == 0 and t <= n_aligned]
    fitting = [t for t in candidates
               if _estimate_vmem_bytes(t, c_in, hidden,
                                       x_bytes, w_bytes, out_bytes) <= budget]
    if not fitting:
        return sub
    # Prefer the largest tile that still leaves >=4 grid steps (DMA/compute
    # overlap + both TCs busy on v7x), but never shrink below 512 rows just to
    # manufacture steps: per-step overhead (~0.35us) dominates small batches.
    for t in fitting:                      # descending order
        if t >= 512 and pl.cdiv(n_aligned, t) >= 4:
            return t
    return fitting[0]                      # small batch: one big tile


def adapter_kernel(x_ref, w1t_ref, w2t_ref, o_ref):
    # Two MXU matmuls + two VPU ReLUs, all VMEM-resident, f32 accumulation.
    h = jnp.dot(x_ref[...], w1t_ref[...], preferred_element_type=jnp.float32)
    h = jnp.maximum(h, 0.0)
    y = jnp.dot(h.astype(w2t_ref.dtype), w2t_ref[...],
                preferred_element_type=jnp.float32)
    y = jnp.maximum(y, 0.0)
    o_ref[...] = y.astype(o_ref.dtype)


def prepare_adapter_weights(w1, w2, *, compute_dtype=None, hidden_multiple=128):
    """One-time weight prep (cache as model state; do NOT call per forward).

    Transposes to row-major MXU layout, optionally casts to the compute dtype
    (bf16 recommended) and zero-pads the bottleneck dim to a multiple of 128
    so the MXU contraction is not almost empty.  Zero padding is exact.
    """
    hidden, c_in = w1.shape
    assert w2.shape == (c_in, hidden), (w1.shape, w2.shape)
    dtype = compute_dtype if compute_dtype is not None else w1.dtype
    w1t = jnp.asarray(w1, dtype).T          # (c_in, hidden)
    w2t = jnp.asarray(w2, dtype).T          # (hidden, c_in)
    hidden_p = _round_up(hidden, hidden_multiple)
    if hidden_p != hidden:
        w1t = jnp.pad(w1t, ((0, 0), (0, hidden_p - hidden)))
        w2t = jnp.pad(w2t, ((0, hidden_p - hidden), (0, 0)))
    return w1t, w2t


def adapter_forward(x, w1t, w2t, *, tile_n=None, out_dtype=None):
    """x: [N, c_in]; (w1t, w2t) from prepare_adapter_weights."""
    n, c_in = x.shape
    c_in_w, hidden = w1t.shape
    assert c_in_w == c_in and w2t.shape == (hidden, c_in), (w1t.shape, w2t.shape)

    compute_dtype = np.dtype(w1t.dtype)
    if x.dtype != compute_dtype:
        x = x.astype(compute_dtype)         # e.g. f32 -> bf16 halves x HBM bytes
    out_dtype = np.dtype(out_dtype) if out_dtype is not None else compute_dtype

    x_bytes = compute_dtype.itemsize
    w_bytes = compute_dtype.itemsize
    o_bytes = out_dtype.itemsize

    cap = _vmem_capacity_bytes()
    budget = int(cap * 0.6)                 # headroom for Mosaic internal scratch
    sub = 16 if min(x_bytes, o_bytes) < 4 else 8
    if tile_n is None:
        tile_n = _choose_tile_n(n, c_in, hidden, x_bytes, w_bytes, o_bytes, budget)
    assert tile_n >= sub and tile_n % sub == 0, (
        f"tile_n={tile_n} must be a multiple of the sublane packing ({sub})")

    # Pad ragged batches with zero rows so every grid step is a full tile.
    n_pad = _round_up(n, tile_n)
    if n_pad != n:
        x = jnp.pad(x, ((0, n_pad - n), (0, 0)))
    grid = (n_pad // tile_n,)

    # Explicit scoped-VMEM limit, derived from this chip's capacity
    # (v5e/v6e: 128 MiB physical; v7x: 64 MiB) instead of the 32 MiB default.
    vmem_limit = min(int(cap * 0.75), cap - 2 * _MIB)

    out = pl.pallas_call(
        adapter_kernel,
        out_shape=jax.ShapeDtypeStruct((n_pad, c_in), out_dtype),
        grid_spec=pltpu.PrefetchScalarGridSpec(
            num_scalar_prefetch=0,
            grid=grid,
            in_specs=[
                pl.BlockSpec((tile_n, c_in), lambda i: (i, 0)),   # x row tile
                pl.BlockSpec((c_in, hidden), lambda i: (0, 0)),   # W1^T (resident)
                pl.BlockSpec((hidden, c_in), lambda i: (0, 0)),   # W2^T (resident)
            ],
            out_specs=pl.BlockSpec((tile_n, c_in), lambda i: (i, 0)),
        ),
        compiler_params=pltpu.CompilerParams(
            dimension_semantics=("parallel",),   # megacore / 2-TC sharding on v7x
            vmem_limit_bytes=vmem_limit,
        ),
    )(x, w1t, w2t)

    return out if n_pad == n else out[:n]


def adapter_reference(x, w1t, w2t):
    """Pure-JAX reference mirroring the kernel's dtype recipe (f32 accumulate)."""
    h = jnp.maximum(
        jnp.dot(x, w1t, preferred_element_type=jnp.float32,
                precision=jax.lax.Precision.HIGHEST), 0.0)
    y = jnp.maximum(
        jnp.dot(h.astype(w2t.dtype), w2t, preferred_element_type=jnp.float32,
                precision=jax.lax.Precision.HIGHEST), 0.0)
    return y


if __name__ == "__main__":
    # Small but lane-friendly shapes consistent with a CLIP adapter:
    # c_in=512 (ViT-B feature width), reduction=4 -> hidden=128, batch=256.
    N, C_IN, REDUCTION = 256, 512, 4
    HIDDEN = C_IN // REDUCTION

    key = jax.random.PRNGKey(0)
    kx, k1, k2 = jax.random.split(key, 3)
    x = jax.random.normal(kx, (N, C_IN), dtype=jnp.float32)
    w1 = jax.random.normal(k1, (HIDDEN, C_IN), dtype=jnp.float32) * (C_IN ** -0.5)
    w2 = jax.random.normal(k2, (C_IN, HIDDEN), dtype=jnp.float32) * (HIDDEN ** -0.5)

    # ---- f32 path (matches the PyTorch module semantics) --------------------
    w1t_f32, w2t_f32 = prepare_adapter_weights(w1, w2, compute_dtype=jnp.float32)
    out = jax.block_until_ready(adapter_forward(x, w1t_f32, w2t_f32))
    ref = adapter_reference(x, w1t_f32, w2t_f32)
    assert out.shape == (N, C_IN) and out.dtype == jnp.float32
    assert jnp.allclose(out, ref, atol=1e-4, rtol=1e-4), "f32 mismatch vs reference"

    # ---- bf16 operands / f32 accumulation (recommended production path) -----
    w1t_bf, w2t_bf = prepare_adapter_weights(w1, w2, compute_dtype=jnp.bfloat16)
    out_bf = jax.block_until_ready(adapter_forward(x, w1t_bf, w2t_bf))
    ref_bf = adapter_reference(x.astype(jnp.bfloat16), w1t_bf, w2t_bf)
    assert out_bf.dtype == jnp.bfloat16
    assert jnp.allclose(out_bf.astype(jnp.float32), ref_bf, atol=2e-2, rtol=2e-2), \
        "bf16 mismatch vs reference"

    # ---- ragged batch + multi-step (pipelined) grid --------------------------
    x_odd = x[: N - 3]
    out_odd = jax.block_until_ready(
        adapter_forward(x_odd, w1t_f32, w2t_f32, tile_n=64))   # grid = (4,)
    assert out_odd.shape == (N - 3, C_IN)
    assert jnp.allclose(out_odd, ref[: N - 3], atol=1e-4, rtol=1e-4), \
        "ragged/tiled mismatch vs reference"

    # ---- larger batch: auto tile_n picks a >=4-step pipelined grid -----------
    NB = 2048
    x_big = jax.random.normal(jax.random.PRNGKey(1), (NB, C_IN), dtype=jnp.float32)
    out_big = jax.block_until_ready(adapter_forward(x_big, w1t_bf, w2t_bf))
    ref_big = adapter_reference(x_big.astype(jnp.bfloat16), w1t_bf, w2t_bf)
    assert out_big.shape == (NB, C_IN)
    assert jnp.allclose(out_big.astype(jnp.float32), ref_big, atol=2e-2, rtol=2e-2), \
        "large-batch mismatch vs reference"

    print("KERNEL_OK")
</pallas_src>

<mosaic_0001>
module attributes {stable_mosaic.version = 11 : i64} {
  func.func @adapter_kernel(%arg0: i32, %arg1: memref<256x512xf32, #tpu.memory_space<vmem>>, %arg2: memref<512x128xf32, #tpu.memory_space<vmem>>, %arg3: memref<128x512xf32, #tpu.memory_space<vmem>>, %arg4: memref<256x512xf32, #tpu.memory_space<vmem>>) attributes {dimension_semantics = [#tpu.dimension_semantics<parallel>], iteration_bounds = array<i64: 1>, scalar_prefetch = 0 : i64, scratch_operands = 0 : i64, tpu.core_type = #tpu.core_type<tc>, window_params = [{transform_indices = @transform_0, window_bounds = array<i64: 256, 512>}, {pipeline_mode = #tpu.pipeline_mode<synchronous>, transform_indices = @transform_1, window_bounds = array<i64: 512, 128>}, {pipeline_mode = #tpu.pipeline_mode<synchronous>, transform_indices = @transform_2, window_bounds = array<i64: 128, 512>}, {transform_indices = @transform_3, window_bounds = array<i64: 256, 512>}]} {
    %c0 = arith.constant 0 : index
    %c0_0 = arith.constant 0 : index
    %0 = vector.load %arg1[%c0, %c0_0] : memref<256x512xf32, #tpu.memory_space<vmem>>, vector<256x512xf32>
    %c0_1 = arith.constant 0 : index
    %c0_2 = arith.constant 0 : index
    %1 = vector.load %arg2[%c0_1, %c0_2] : memref<512x128xf32, #tpu.memory_space<vmem>>, vector<512x128xf32>
    %cst = arith.constant dense<0.000000e+00> : vector<256x128xf32>
    %2 = tpu.matmul %0, %1, %cst {dimension_numbers = #tpu.dot_dimension_numbers<[1], [0], [0], [1], [0, 0, 1, 1], [], []>} : vector<256x512xf32>, vector<512x128xf32>, vector<256x128xf32> -> vector<256x128xf32>
    %cst_3 = arith.constant 0.000000e+00 : f32
    %3 = vector.broadcast %cst_3 : f32 to vector<256x128xf32>
    %4 = arith.maximumf %2, %3 : vector<256x128xf32>
    %c0_4 = arith.constant 0 : index
    %c0_5 = arith.constant 0 : index
    %5 = vector.load %arg3[%c0_4, %c0_5] : memref<128x512xf32, #tpu.memory_space<vmem>>, vector<128x512xf32>
    %cst_6 = arith.constant dense<0.000000e+00> : vector<256x512xf32>
    %6 = tpu.matmul %4, %5, %cst_6 {dimension_numbers = #tpu.dot_dimension_numbers<[1], [0], [0], [1], [0, 0, 1, 1], [], []>} : vector<256x128xf32>, vector<128x512xf32>, vector<256x512xf32> -> vector<256x512xf32>
    %cst_7 = arith.constant 0.000000e+00 : f32
    %7 = vector.broadcast %cst_7 : f32 to vector<256x512xf32>
    %8 = arith.maximumf %6, %7 : vector<256x512xf32>
    %c0_8 = arith.constant 0 : index
    %c0_9 = arith.constant 0 : index
    %9 = vector.load %arg4[%c0_8, %c0_9] : memref<256x512xf32, #tpu.memory_space<vmem>>, vector<256x512xf32>
    tpu.vector_store %arg4[%c0_8, %c0_9], %8 {strides = array<i32>} : memref<256x512xf32, #tpu.memory_space<vmem>>, vector<256x512xf32>,
    return
  }
  func.func @transform_0(%arg0: i32) -> (i32, i32) {
    %c0_i32 = arith.constant 0 : i32
    %c0_i32_0 = arith.constant 0 : i32
    return %arg0, %c0_i32 : i32, i32
  }
  func.func @transform_1(%arg0: i32) -> (i32, i32) {
    %c0_i32 = arith.constant 0 : i32
    %c0_i32_0 = arith.constant 0 : i32
    %c0_i32_1 = arith.constant 0 : i32
    return %c0_i32, %c0_i32_0 : i32, i32
  }
  func.func @transform_2(%arg0: i32) -> (i32, i32) {
    %c0_i32 = arith.constant 0 : i32
    %c0_i32_0 = arith.constant 0 : i32
    %c0_i32_1 = arith.constant 0 : i32
    return %c0_i32, %c0_i32_0 : i32, i32
  }
  func.func @transform_3(%arg0: i32) -> (i32, i32) {
    %c0_i32 = arith.constant 0 : i32
    %c0_i32_0 = arith.constant 0 : i32
    return %arg0, %c0_i32 : i32, i32
  }
}

</mosaic_0001>

<bundles_post_ra>
// kernel: tpu_custom_call.1
= control target key start
LH: loop header
LB: loop body
LE: loop exit
PB: predicated region body
PF: predicated region fallthrough
CT: control target
= control target key end

     0   :  { %8 = vsyncpa [#allocation3], 0  ;;  %s1785_s0 = inlined_call_operand.hbm [shape: f32[256,512], index: 0, kind: input, shape index: {}]   ;;  %s1786_s1 = inlined_call_operand.hbm [shape: f32[512,128], index: 1, kind: input, shape index: {}]   ;;  %s1787_s2 = inlined_call_operand.hbm [shape: f32[128,512], index: 2, kind: input, shape index: {}]   ;;  %s1788_s3 = inlined_call_operand.hbm [shape: f32[256,512], index: 3, kind: output, shape index: {}]  }
   0x1   :  { %9 = vsyncpa [#allocation6], 0  ;;  %s28_s14 = sshll.u32 %s1786_s1, 4  ;;  %s29_s14 = int_to_ptr.hbm [resolvable:$true] %s28_s14 }
   0x2   :  { %10 = vsyncpa [#allocation4], 0  ;;  %s1640_s15 = smov [#allocation5]   ;;  %s15_s19 = sshll.u32 %s1785_s0, 4  ;;  %s16_s19 = int_to_ptr.hbm [resolvable:$true] %s15_s19 }
   0x3   :  { %s30_s16 = sshll.u32 %s1640_s15, 4  ;;  %s1641_s20 = smov 128   ;;  %s31_s16 = int_to_ptr.vmem [resolvable:$true] %s30_s16 }
   0x4   :  { %s1642_s21 = smov 8   ;;  %s1643_s22 = smov [#allocation2]  }
   0x5   :  { %36 = dma.hbm_to_vmem [thread:$0]  %s29_s14, 8192, %s31_s16, [#allocation6], %s1641_s20, %s1641_s20, %s1642_s21  }
   0x6   :  { %s17_s23 = sshll.u32 %s1643_s22, 4  ;;  %s1644_s24 = smov 512   ;;  %s18_s23 = int_to_ptr.vmem [resolvable:$true] %s17_s23 }
   0x7   :  { %s1645_s25 = smov 32   ;;  %s41_s27 = sshll.u32 %s1787_s2, 4  ;;  %s42_s27 = int_to_ptr.hbm [resolvable:$true] %s41_s27 }
   0x8   :  { %23 = dma.hbm_to_vmem [thread:$0]  %s16_s19, 16384, %s18_s23, [#allocation3], %s1644_s24, %s1644_s24, %s1645_s25  }
   0x9   :  { %s1646_s28 = smov [#allocation7]  }
   0xa   :  { %s43_s0 = sshll.u32 %s1646_s28, 4  ;;  %s44_s0 = int_to_ptr.vmem [resolvable:$true] %s43_s0 }
   0xb   :  { %49 = dma.hbm_to_vmem [thread:$0]  %s42_s27, 8192, %s44_s0, [#allocation6], %s1644_s24, %s1644_s24, %s1645_s25  }
   0xc   :  { %1634 = dma.done.wait [#allocation3], 16384  }
   0xd   :  { %1635 = vsyncadd [#allocation3], 4294950912 }
   0xe   :  { %1636 = dma.done.wait [#allocation6], 16384  }
   0xf   :  { %1637 = vsyncadd [#allocation6], 4294950912  ;;  %v205_v0 = vld [vmem:[#allocation5 + $0x78] sm:$0xff]  ;;  %v204_v4 = vld [vmem:[#allocation5 + $0x70] sm:$0xff]  ;;  %s1647_s2 = smov [#allocation8]   ;;  %s1516_s5 = sshll.u32 %s1788_s3, 4  ;;  %s1517_s5 = int_to_ptr.hbm [resolvable:$true] %s1516_s5 }
  0x10   :  { %v221_v1 = vld [vmem:[#allocation5 + $0xf8] sm:$0xff]  ;;  %254 = vmatpush.msra.mxu0 %v205_v0  ;;  %v220_v5 = vld [vmem:[#allocation5 + $0xf0] sm:$0xff]  ;;  %v203_v8 = vld [vmem:[#allocation5 + $0x68] sm:$0xff]  ;;  %s1514_s29 = sshll.u32 %s1647_s2, 4  ;;  %s1515_s29 = int_to_ptr.vmem [resolvable:$true] %s1514_s29 }
  0x11   :  { %v237_v2 = vld [vmem:[#allocation5 + $0x178] sm:$0xff]  ;;  %367 = vmatpush.msra.mxu1 %v221_v1  ;;  %v236_v6 = vld [vmem:[#allocation5 + $0x170] sm:$0xff]  ;;  %v219_v9 = vld [vmem:[#allocation5 + $0xe8] sm:$0xff] }
  0x12   :  { %v253_v3 = vld [vmem:[#allocation5 + $0x1f8] sm:$0xff]  ;;  %480 = vmatpush.msra.mxu2 %v237_v2  ;;  %v252_v7 = vld [vmem:[#allocation5 + $0x1f0] sm:$0xff]  ;;  %255 = vmatpush.msra.mxu0 %v204_v4  ;;  %v235_v10 = vld [vmem:[#allocation5 + $0x168] sm:$0xff] }
  0x13   :  { %593 = vmatpush.msra.mxu3 %v253_v3  ;;  %368 = vmatpush.msra.mxu1 %v220_v5  ;;  %v251_v11 = vld [vmem:[#allocation5 + $0x1e8] sm:$0xff]  ;;  %v202_v12 = vld [vmem:[#allocation5 + $0x60] sm:$0xff]  ;;  %v201_v16 = vld [vmem:[#allocation5 + $0x58] sm:$0xff] }
  0x14   :  { %481 = vmatpush.msra.mxu2 %v236_v6  ;;  %v218_v13 = vld [vmem:[#allocation5 + $0xe0] sm:$0xff]  ;;  %256 = vmatpush.msra.mxu0 %v203_v8  ;;  %v217_v17 = vld [vmem:[#allocation5 + $0xd8] sm:$0xff]  ;;  %v200_v20 = vld [vmem:[#allocation5 + $0x50] sm:$0xff] }
  0x15   :  { %594 = vmatpush.msra.mxu3 %v252_v7  ;;  %369 = vmatpush.msra.mxu1 %v219_v9  ;;  %v234_v14 = vld [vmem:[#allocation5 + $0x160] sm:$0xff]  ;;  %v233_v18 = vld [vmem:[#allocation5 + $0x158] sm:$0xff]  ;;  %v216_v21 = vld [vmem:[#allocation5 + $0xd0] sm:$0xff] }
  0x16   :  { %v250_v15 = vld [vmem:[#allocation5 + $0x1e0] sm:$0xff]  ;;  %482 = vmatpush.msra.mxu2 %v235_v10  ;;  %257 = vmatpush.msra.mxu0 %v202_v12  ;;  %v249_v19 = vld [vmem:[#allocation5 + $0x1d8] sm:$0xff]  ;;  %v232_v22 = vld [vmem:[#allocation5 + $0x150] sm:$0xff] }
  0x17   :  { %595 = vmatpush.msra.mxu3 %v251_v11  ;;  %370 = vmatpush.msra.mxu1 %v218_v13  ;;  %v248_v23 = vld [vmem:[#allocation5 + $0x1d0] sm:$0xff]  ;;  %v199_v24 = vld [vmem:[#allocation5 + $0x48] sm:$0xff]  ;;  %v198_v28 = vld [vmem:[#allocation5 + $0x40] sm:$0xff] }
  0x18   :  { %483 = vmatpush.msra.mxu2 %v234_v14  ;;  %258 = vmatpush.msra.mxu0 %v201_v16  ;;  %v215_v25 = vld [vmem:[#allocation5 + $0xc8] sm:$0xff]  ;;  %v214_v29 = vld [vmem:[#allocation5 + $0xc0] sm:$0xff]  ;;  %v197_v32 = vld [vmem:[#allocation5 + $0x38] sm:$0xff] }
  0x19   :  { %596 = vmatpush.msra.mxu3 %v250_v15  ;;  %371 = vmatpush.msra.mxu1 %v217_v17  ;;  %v231_v26 = vld [vmem:[#allocation5 + $0x148] sm:$0xff]  ;;  %v230_v30 = vld [vmem:[#allocation5 + $0x140] sm:$0xff]  ;;  %v213_v33 = vld [vmem:[#allocation5 + $0xb8] sm:$0xff] }
  0x1a   :  { %484 = vmatpush.msra.mxu2 %v233_v18  ;;  %259 = vmatpush.msra.mxu0 %v200_v20  ;;  %v247_v27 = vld [vmem:[#allocation5 + $0x1c8] sm:$0xff]  ;;  %v246_v31 = vld [vmem:[#allocation5 + $0x1c0] sm:$0xff]  ;;  %v229_v34 = vld [vmem:[#allocation5 + $0x138] sm:$0xff] }
  0x1b   :  { %597 = vmatpush.msra.mxu3 %v249_v19  ;;  %372 = vmatpush.msra.mxu1 %v216_v21  ;;  %v245_v35 = vld [vmem:[#allocation5 + $0x1b8] sm:$0xff]  ;;  %v196_v36 = vld [vmem:[#allocation5 + $0x30] sm:$0xff]  ;;  %v195_v40 = vld [vmem:[#allocation5 + $0x28] sm:$0xff] }
  0x1c   :  { %485 = vmatpush.msra.mxu2 %v232_v22  ;;  %260 = vmatpush.msra.mxu0 %v199_v24  ;;  %v212_v37 = vld [vmem:[#allocation5 + $0xb0] sm:$0xff]  ;;  %v211_v41 = vld [vmem:[#allocation5 + $0xa8] sm:$0xff]  ;;  %v194_v44 = vld [vmem:[#allocation5 + $0x20] sm:$0xff] }
  0x1d   :  { %598 = vmatpush.msra.mxu3 %v248_v23  ;;  %373 = vmatpush.msra.mxu1 %v215_v25  ;;  %v228_v38 = vld [vmem:[#allocation5 + $0x130] sm:$0xff]  ;;  %v227_v42 = vld [vmem:[#allocation5 + $0x128] sm:$0xff]  ;;  %v210_v45 = vld [vmem:[#allocation5 + $0xa0] sm:$0xff] }
  0x1e   :  { %486 = vmatpush.msra.mxu2 %v231_v26  ;;  %261 = vmatpush.msra.mxu0 %v198_v28  ;;  %v244_v39 = vld [vmem:[#allocation5 + $0x1b0] sm:$0xff]  ;;  %v243_v43 = vld [vmem:[#allocation5 + $0x1a8] sm:$0xff]  ;;  %v226_v46 = vld [vmem:[#allocation5 + $0x120] sm:$0xff] }
  0x1f   :  { %599 = vmatpush.msra.mxu3 %v247_v27  ;;  %374 = vmatpush.msra.mxu1 %v214_v29  ;;  %v242_v47 = vld [vmem:[#allocation5 + $0x1a0] sm:$0xff]  ;;  %v193_v48 = vld [vmem:[#allocation5 + $0x18] sm:$0xff]  ;;  %v192_v52 = vld [vmem:[#allocation5 + $0x10] sm:$0xff] }
  0x20   :  { %487 = vmatpush.msra.mxu2 %v230_v30  ;;  %262 = vmatpush.msra.mxu0 %v197_v32  ;;  %v209_v49 = vld [vmem:[#allocation5 + $0x98] sm:$0xff]  ;;  %v208_v53 = vld [vmem:[#allocation5 + $0x90] sm:$0xff]  ;;  %v191_v56 = vld [vmem:[#allocation5 + $0x8] sm:$0xff] }
  0x21   :  { %600 = vmatpush.msra.mxu3 %v246_v31  ;;  %375 = vmatpush.msra.mxu1 %v213_v33  ;;  %v225_v50 = vld [vmem:[#allocation5 + $0x118] sm:$0xff]  ;;  %v224_v54 = vld [vmem:[#allocation5 + $0x110] sm:$0xff]  ;;  %v207_v57 = vld [vmem:[#allocation5 + $0x88] sm:$0xff] }
  0x22   :  { %488 = vmatpush.msra.mxu2 %v229_v34  ;;  %263 = vmatpush.msra.mxu0 %v196_v36  ;;  %v241_v51 = vld [vmem:[#allocation5 + $0x198] sm:$0xff]  ;;  %v240_v55 = vld [vmem:[#allocation5 + $0x190] sm:$0xff]  ;;  %v223_v58 = vld [vmem:[#allocation5 + $0x108] sm:$0xff] }
  0x23   :  { %601 = vmatpush.msra.mxu3 %v245_v35  ;;  %376 = vmatpush.msra.mxu1 %v212_v37  ;;  %v239_v59 = vld [vmem:[#allocation5 + $0x188] sm:$0xff]  ;;  %v190_v60 = vld [vmem:[#allocation5] sm:$0xff]  ;;  %v64_v2 = vld [vmem:[#allocation2 + $0x10] sm:$0xff] }
  0x24   :  { %489 = vmatpush.msra.mxu2 %v228_v38  ;;  %264 = vmatpush.msra.mxu0 %v195_v40  ;;  %v206_v61 = vld [vmem:[#allocation5 + $0x80] sm:$0xff]  ;;  %v63_v1 = vld [vmem:[#allocation2 + $0x8] sm:$0xff]  ;;  %v65_v3 = vld [vmem:[#allocation2 + $0x18] sm:$0xff] }
  0x25   :  { %602 = vmatpush.msra.mxu3 %v244_v39  ;;  %377 = vmatpush.msra.mxu1 %v211_v41  ;;  %v222_v62 = vld [vmem:[#allocation5 + $0x100] sm:$0xff]  ;;  %v800_v4 = vld [vmem:[#allocation7 + $0x1f0] sm:$0xff]  ;;  %v801_v5 = vld [vmem:[#allocation7 + $0x1f8] sm:$0xff] }
  0x26   :  { %490 = vmatpush.msra.mxu2 %v227_v42  ;;  %265 = vmatpush.msra.mxu0 %v194_v44  ;;  %v238_v63 = vld [vmem:[#allocation5 + $0x180] sm:$0xff]  ;;  %v799_v7 = vld [vmem:[#allocation7 + $0x1e8] sm:$0xff]  ;;  %v796_v8 = vld [vmem:[#allocation7 + $0x1d0] sm:$0xff] }
  0x27   :  { %603 = vmatpush.msra.mxu3 %v243_v43  ;;  %378 = vmatpush.msra.mxu1 %v210_v45  ;;  %v62_v0 = vld [vmem:[#allocation2] sm:$0xff]  ;;  %v797_v9 = vld [vmem:[#allocation7 + $0x1d8] sm:$0xff]  ;;  %v795_v11 = vld [vmem:[#allocation7 + $0x1c8] sm:$0xff] }
  0x28   :  { %491 = vmatpush.msra.mxu2 %v226_v46  ;;  %266 = vmatpush.msra.mxu0 %v193_v48  ;;  %v798_v6 = vld [vmem:[#allocation7 + $0x1e0] sm:$0xff]  ;;  %v792_v12 = vld [vmem:[#allocation7 + $0x1b0] sm:$0xff]  ;;  %v793_v13 = vld [vmem:[#allocation7 + $0x1b8] sm:$0xff] }
  0x29   :  { %604 = vmatpush.msra.mxu3 %v242_v47  ;;  %379 = vmatpush.msra.mxu1 %v209_v49  ;;  %v794_v10 = vld [vmem:[#allocation7 + $0x1c0] sm:$0xff]  ;;  %v791_v15 = vld [vmem:[#allocation7 + $0x1a8] sm:$0xff]  ;;  %v68_v18 = vld [vmem:[#allocation2 + $0x30] sm:$0xff] }
  0x2a   :  { %492 = vmatpush.msra.mxu2 %v225_v50  ;;  %267 = vmatpush.msra.mxu0 %v192_v52  ;;  %v790_v14 = vld [vmem:[#allocation7 + $0x1a0] sm:$0xff]  ;;  %v67_v17 = vld [vmem:[#allocation2 + $0x28] sm:$0xff]  ;;  %v69_v19 = vld [vmem:[#allocation2 + $0x38] sm:$0xff] }
  0x2b   :  { %605 = vmatpush.msra.mxu3 %v241_v51  ;;  %380 = vmatpush.msra.mxu1 %v208_v53  ;;  %v66_v16 = vld [vmem:[#allocation2 + $0x20] sm:$0xff]  ;;  %v71_v21 = vld [vmem:[#allocation2 + $0x48] sm:$0xff]  ;;  %v72_v22 = vld [vmem:[#allocation2 + $0x50] sm:$0xff] }
  0x2c   :  { %493 = vmatpush.msra.mxu2 %v224_v54  ;;  %268 = vmatpush.msra.mxu0 %v191_v56  ;;  %v70_v20 = vld [vmem:[#allocation2 + $0x40] sm:$0xff]  ;;  %v73_v23 = vld [vmem:[#allocation2 + $0x58] sm:$0xff]  ;;  %v788_v24 = vld [vmem:[#allocation7 + $0x190] sm:$0xff] }
  0x2d   :  { %606 = vmatpush.msra.mxu3 %v240_v55  ;;  %381 = vmatpush.msra.mxu1 %v207_v57  ;;  %v789_v25 = vld [vmem:[#allocation7 + $0x198] sm:$0xff]  ;;  %v786_v26 = vld [vmem:[#allocation7 + $0x180] sm:$0xff]  ;;  %v787_v27 = vld [vmem:[#allocation7 + $0x188] sm:$0xff] }
  0x2e   :  { %494 = vmatpush.msra.mxu2 %v223_v58  ;;  %269 = vmatpush.msra.mxu0 %v190_v60  ;;  %v74_v28 = vld [vmem:[#allocation2 + $0x60] sm:$0xff]  ;;  %v75_v29 = vld [vmem:[#allocation2 + $0x68] sm:$0xff]  ;;  %v76_v30 = vld [vmem:[#allocation2 + $0x70] sm:$0xff] }
  0x2f   :  { %607 = vmatpush.msra.mxu3 %v239_v59  ;;  %382 = vmatpush.msra.mxu1 %v206_v61  ;;  %v77_v31 = vld [vmem:[#allocation2 + $0x78] sm:$0xff]  ;;  %v78_v32 = vld [vmem:[#allocation2 + $0x80] sm:$0xff]  ;;  %v79_v33 = vld [vmem:[#allocation2 + $0x88] sm:$0xff] }
  0x30   :  { %495 = vmatpush.msra.mxu2 %v222_v62  ;;  %270 = vmatmul.f32.vlgmr.msra.gmra.mxu0 %v62_v0  ;;  %v80_v34 = vld [vmem:[#allocation2 + $0x90] sm:$0xff]  ;;  %v81_v35 = vld [vmem:[#allocation2 + $0x98] sm:$0xff]  ;;  %v782_v38 = vld [vmem:[#allocation7 + $0x160] sm:$0xff] }
  0x31   :  { %608 = vmatpush.msra.mxu3 %v238_v63  ;;  %383 = vmatmul.f32.vlgmr.msra.gmra.mxu1 %v63_v1  ;;  %v784_v36 = vld [vmem:[#allocation7 + $0x170] sm:$0xff]  ;;  %v785_v37 = vld [vmem:[#allocation7 + $0x178] sm:$0xff]  ;;  %v783_v39 = vld [vmem:[#allocation7 + $0x168] sm:$0xff] }
  0x32   :  { %496 = vmatmul.f32.vlgmr.msra.gmra.mxu2 %v64_v2  ;;  %609 = vmatmul.f32.vlgmr.msra.gmra.mxu3 %v65_v3  ;;  %v82_v40 = vld [vmem:[#allocation2 + $0xa0] sm:$0xff]  ;;  %v83_v41 = vld [vmem:[#allocation2 + $0xa8] sm:$0xff]  ;;  %v84_v42 = vld [vmem:[#allocation2 + $0xb0] sm:$0xff] }
  0x33   :  { %1028 = vmatpush.msrb.mxu2 %v800_v4  ;;  %1141 = vmatpush.msrb.mxu3 %v801_v5  ;;  %v85_v43 = vld [vmem:[#allocation2 + $0xb8] sm:$0xff]  ;;  %v86_v44 = vld [vmem:[#allocation2 + $0xc0] sm:$0xff]  ;;  %v87_v45 = vld [vmem:[#allocation2 + $0xc8] sm:$0xff] }
  0x34   :  { %802 = vmatpush.msrb.mxu0 %v798_v6  ;;  %915 = vmatpush.msrb.mxu1 %v799_v7  ;;  %v88_v46 = vld [vmem:[#allocation2 + $0xd0] sm:$0xff]  ;;  %v89_v47 = vld [vmem:[#allocation2 + $0xd8] sm:$0xff]  ;;  %v778_v50 = vld [vmem:[#allocation7 + $0x140] sm:$0xff] }
  0x35   :  { %1029 = vmatpush.msrb.mxu2 %v796_v8  ;;  %1142 = vmatpush.msrb.mxu3 %v797_v9  ;;  %v780_v48 = vld [vmem:[#allocation7 + $0x150] sm:$0xff]  ;;  %v781_v49 = vld [vmem:[#allocation7 + $0x158] sm:$0xff]  ;;  %v779_v51 = vld [vmem:[#allocation7 + $0x148] sm:$0xff] }
  0x36   :  { %803 = vmatpush.msrb.mxu0 %v794_v10  ;;  %916 = vmatpush.msrb.mxu1 %v795_v11  ;;  %v90_v52 = vld [vmem:[#allocation2 + $0xe0] sm:$0xff]  ;;  %v91_v53 = vld [vmem:[#allocation2 + $0xe8] sm:$0xff]  ;;  %v92_v54 = vld [vmem:[#allocation2 + $0xf0] sm:$0xff] }
  0x37   :  { %1030 = vmatpush.msrb.mxu2 %v792_v12  ;;  %1143 = vmatpush.msrb.mxu3 %v793_v13  ;;  %v93_v55 = vld [vmem:[#allocation2 + $0xf8] sm:$0xff]  ;;  %v94_v56 = vld [vmem:[#allocation2 + $0x100] sm:$0xff]  ;;  %v95_v57 = vld [vmem:[#allocation2 + $0x108] sm:$0xff] }
  0x38   :  { %804 = vmatpush.msrb.mxu0 %v790_v14  ;;  %917 = vmatpush.msrb.mxu1 %v791_v15  ;;  %v96_v58 = vld [vmem:[#allocation2 + $0x110] sm:$0xff]  ;;  %v97_v59 = vld [vmem:[#allocation2 + $0x118] sm:$0xff]  ;;  %v774_v62 = vld [vmem:[#allocation7 + $0x120] sm:$0xff] }
  0x39   :  { %273 = vmatmul.f32.gmra.mxu0 %v66_v16  ;;  %386 = vmatmul.f32.gmra.mxu1 %v67_v17  ;;  %v776_v60 = vld [vmem:[#allocation7 + $0x130] sm:$0xff]  ;;  %v777_v61 = vld [vmem:[#allocation7 + $0x138] sm:$0xff]  ;;  %v775_v63 = vld [vmem:[#allocation7 + $0x128] sm:$0xff] }
  0x3a   :  { %499 = vmatmul.f32.gmra.mxu2 %v68_v18  ;;  %612 = vmatmul.f32.gmra.mxu3 %v69_v19  ;;  %v98_v0 = vld [vmem:[#allocation2 + $0x120] sm:$0xff]  ;;  %v99_v1 = vld [vmem:[#allocation2 + $0x128] sm:$0xff]  ;;  %v100_v2 = vld [vmem:[#allocation2 + $0x130] sm:$0xff] }
  0x3b   :  { %1031 = vmatpush.msrb.mxu2 %v788_v24  ;;  %1144 = vmatpush.msrb.mxu3 %v789_v25  ;;  %v101_v3 = vld [vmem:[#allocation2 + $0x138] sm:$0xff]  ;;  %v102_v4 = vld [vmem:[#allocation2 + $0x140] sm:$0xff]  ;;  %v103_v5 = vld [vmem:[#allocation2 + $0x148] sm:$0xff] }
  0x3c   :  { %805 = vmatpush.msrb.mxu0 %v786_v26  ;;  %918 = vmatpush.msrb.mxu1 %v787_v27  ;;  %v104_v6 = vld [vmem:[#allocation2 + $0x150] sm:$0xff]  ;;  %v105_v7 = vld [vmem:[#allocation2 + $0x158] sm:$0xff]  ;;  %v770_v10 = vld [vmem:[#allocation7 + $0x100] sm:$0xff] }
  0x3d   :  { %1032 = vmatpush.msrb.mxu2 %v784_v36  ;;  %1145 = vmatpush.msrb.mxu3 %v785_v37  ;;  %v772_v8 = vld [vmem:[#allocation7 + $0x110] sm:$0xff]  ;;  %v773_v9 = vld [vmem:[#allocation7 + $0x118] sm:$0xff]  ;;  %v771_v11 = vld [vmem:[#allocation7 + $0x108] sm:$0xff] }
  0x3e   :  { %806 = vmatpush.msrb.mxu0 %v782_v38  ;;  %919 = vmatpush.msrb.mxu1 %v783_v39  ;;  %v106_v12 = vld [vmem:[#allocation2 + $0x160] sm:$0xff]  ;;  %v107_v13 = vld [vmem:[#allocation2 + $0x168] sm:$0xff]  ;;  %v108_v14 = vld [vmem:[#allocation2 + $0x170] sm:$0xff] }
  0x3f   :  { %1033 = vmatpush.msrb.mxu2 %v780_v48  ;;  %1146 = vmatpush.msrb.mxu3 %v781_v49  ;;  %v109_v15 = vld [vmem:[#allocation2 + $0x178] sm:$0xff]  ;;  %v110_v16 = vld [vmem:[#allocation2 + $0x180] sm:$0xff]  ;;  %v111_v17 = vld [vmem:[#allocation2 + $0x188] sm:$0xff] }
  0x40   :  { %807 = vmatpush.msrb.mxu0 %v778_v50  ;;  %920 = vmatpush.msrb.mxu1 %v779_v51  ;;  %v112_v18 = vld [vmem:[#allocation2 + $0x190] sm:$0xff]  ;;  %v113_v19 = vld [vmem:[#allocation2 + $0x198] sm:$0xff]  ;;  %v766_v26 = vld [vmem:[#allocation7 + $0xe0] sm:$0xff] }
  0x41   :  { %276 = vmatmul.f32.gmra.mxu0 %v70_v20  ;;  %389 = vmatmul.f32.gmra.mxu1 %v71_v21  ;;  %v768_v20 = vld [vmem:[#allocation7 + $0xf0] sm:$0xff]  ;;  %v769_v21 = vld [vmem:[#allocation7 + $0xf8] sm:$0xff]  ;;  %v767_v27 = vld [vmem:[#allocation7 + $0xe8] sm:$0xff] }
  0x42   :  { %502 = vmatmul.f32.gmra.mxu2 %v72_v22  ;;  %615 = vmatmul.f32.gmra.mxu3 %v73_v23  ;;  %v114_v22 = vld [vmem:[#allocation2 + $0x1a0] sm:$0xff]  ;;  %v115_v23 = vld [vmem:[#allocation2 + $0x1a8] sm:$0xff]  ;;  %v116_v24 = vld [vmem:[#allocation2 + $0x1b0] sm:$0xff] }
  0x43   :  { %1034 = vmatpush.msrb.mxu2 %v776_v60  ;;  %1147 = vmatpush.msrb.mxu3 %v777_v61  ;;  %v117_v25 = vld [vmem:[#allocation2 + $0x1b8] sm:$0xff]  ;;  %v124_v36 = vld [vmem:[#allocation2 + $0x1f0] sm:$0xff]  ;;  %v762_v38 = vld [vmem:[#allocation7 + $0xc0] sm:$0xff] }
  0x44   :  { %808 = vmatpush.msrb.mxu0 %v774_v62  ;;  %921 = vmatpush.msrb.mxu1 %v775_v63  ;;  %v125_v37 = vld [vmem:[#allocation2 + $0x1f8] sm:$0xff]  ;;  %v763_v39 = vld [vmem:[#allocation7 + $0xc8] sm:$0xff]  ;;  %v758_v60 = vld [vmem:[#allocation7 + $0xa0] sm:$0xff] }
  0x45   :  { %1035 = vmatpush.msrb.mxu2 %v772_v8  ;;  %1148 = vmatpush.msrb.mxu3 %v773_v9  ;;  %v761_v48 = vld [vmem:[#allocation7 + $0xb8] sm:$0xff]  ;;  %v759_v61 = vld [vmem:[#allocation7 + $0xa8] sm:$0xff]  ;;  %v756_v9 = vld [vmem:[#allocation7 + $0x90] sm:$0xff] }
  0x46   :  { %809 = vmatpush.msrb.mxu0 %v770_v10  ;;  %922 = vmatpush.msrb.mxu1 %v771_v11  ;;  %v757_v10 = vld [vmem:[#allocation7 + $0x98] sm:$0xff] }
  0x47   :  { %1036 = vmatpush.msrb.mxu2 %v768_v20  ;;  %1149 = vmatpush.msrb.mxu3 %v769_v21 }
  0x48   :  { %810 = vmatpush.msrb.mxu0 %v766_v26  ;;  %923 = vmatpush.msrb.mxu1 %v767_v27 }
  0x49   :  { %279 = vmatmul.f32.gmra.mxu0 %v74_v28  ;;  %392 = vmatmul.f32.gmra.mxu1 %v75_v29  ;;  %v118_v28 = vld [vmem:[#allocation2 + $0x1c0] sm:$0xff]  ;;  %v119_v29 = vld [vmem:[#allocation2 + $0x1c8] sm:$0xff] }
  0x4a   :  { %505 = vmatmul.f32.gmra.mxu2 %v76_v30  ;;  %618 = vmatmul.f32.gmra.mxu3 %v77_v31  ;;  %v120_v30 = vld [vmem:[#allocation2 + $0x1d0] sm:$0xff]  ;;  %v121_v31 = vld [vmem:[#allocation2 + $0x1d8] sm:$0xff] }
  0x4b   :  { %811 = vmatpush.msrb.mxu0 %v762_v38  ;;  %924 = vmatpush.msrb.mxu1 %v763_v39 }
  0x4d   :  { %812 = vmatpush.msrb.mxu0 %v758_v60  ;;  %925 = vmatpush.msrb.mxu1 %v759_v61 }
  0x51   :  { %282 = vmatmul.f32.gmra.mxu0 %v78_v32  ;;  %395 = vmatmul.f32.gmra.mxu1 %v79_v33  ;;  %v764_v32 = vld [vmem:[#allocation7 + $0xd0] sm:$0xff]  ;;  %v765_v33 = vld [vmem:[#allocation7 + $0xd8] sm:$0xff] }
  0x52   :  { %508 = vmatmul.f32.gmra.mxu2 %v80_v34  ;;  %621 = vmatmul.f32.gmra.mxu3 %v81_v35  ;;  %v122_v34 = vld [vmem:[#allocation2 + $0x1e0] sm:$0xff]  ;;  %v123_v35 = vld [vmem:[#allocation2 + $0x1e8] sm:$0xff] }
  0x53   :  { %1037 = vmatpush.msrb.mxu2 %v764_v32  ;;  %1150 = vmatpush.msrb.mxu3 %v765_v33  ;;  %v145_v32 = vld [vmem:[#allocation2 + $0x298] sm:$0xff] }
  0x55   :  { %1151 = vmatpush.msrb.mxu3 %v761_v48  ;;  %v750_v48 = vld [vmem:[#allocation7 + $0x60] sm:$0xff] }
  0x57   :  { %1152 = vmatpush.msrb.mxu3 %v757_v10 }
  0x59   :  { %285 = vmatmul.f32.gmra.mxu0 %v82_v40  ;;  %398 = vmatmul.f32.gmra.mxu1 %v83_v41 }
  0x5a   :  { %511 = vmatmul.f32.gmra.mxu2 %v84_v42  ;;  %624 = vmatmul.f32.gmra.mxu3 %v85_v43  ;;  %v126_v42 = vld [vmem:[#allocation2 + $0x200] sm:$0xff]  ;;  %v127_v43 = vld [vmem:[#allocation2 + $0x208] sm:$0xff] }
  0x61   :  { %288 = vmatmul.f32.gmra.mxu0 %v86_v44  ;;  %401 = vmatmul.f32.gmra.mxu1 %v87_v45  ;;  %v128_v44 = vld [vmem:[#allocation2 + $0x210] sm:$0xff]  ;;  %v129_v45 = vld [vmem:[#allocation2 + $0x218] sm:$0xff] }
  0x62   :  { %514 = vmatmul.f32.gmra.mxu2 %v88_v46  ;;  %627 = vmatmul.f32.gmra.mxu3 %v89_v47  ;;  %v760_v47 = vld [vmem:[#allocation7 + $0xb0] sm:$0xff] }
  0x63   :  { %1038 = vmatpush.msrb.mxu2 %v760_v47 }
  0x65   :  { %1039 = vmatpush.msrb.mxu2 %v756_v9  ;;  %v157_v9 = vld [vmem:[#allocation2 + $0x2f8] sm:$0xff] }
  0x69   :  { %291 = vmatmul.f32.gmra.mxu0 %v90_v52  ;;  %404 = vmatmul.f32.gmra.mxu1 %v91_v53 }
  0x6a   :  { %517 = vmatmul.f32.gmra.mxu2 %v92_v54  ;;  %630 = vmatmul.f32.gmra.mxu3 %v93_v55  ;;  %v130_v54 = vld [vmem:[#allocation2 + $0x220] sm:$0xff]  ;;  %v131_v55 = vld [vmem:[#allocation2 + $0x228] sm:$0xff] }
  0x71   :  { %294 = vmatmul.f32.gmra.mxu0 %v94_v56  ;;  %407 = vmatmul.f32.gmra.mxu1 %v95_v57  ;;  %v132_v56 = vld [vmem:[#allocation2 + $0x230] sm:$0xff]  ;;  %v133_v57 = vld [vmem:[#allocation2 + $0x238] sm:$0xff] }
  0x72   :  { %520 = vmatmul.f32.gmra.mxu2 %v96_v58  ;;  %633 = vmatmul.f32.gmra.mxu3 %v97_v59 }
  0x79   :  { %297 = vmatmul.f32.gmra.mxu0 %v98_v0  ;;  %410 = vmatmul.f32.gmra.mxu1 %v99_v1 }
  0x7a   :  { %523 = vmatmul.f32.gmra.mxu2 %v100_v2  ;;  %636 = vmatmul.f32.gmra.mxu3 %v101_v3  ;;  %v134_v3 = vld [vmem:[#allocation2 + $0x240] sm:$0xff] }
  0x81   :  { %300 = vmatmul.f32.gmra.mxu0 %v102_v4  ;;  %413 = vmatmul.f32.gmra.mxu1 %v103_v5  ;;  %v135_v4 = vld [vmem:[#allocation2 + $0x248] sm:$0xff]  ;;  %v136_v5 = vld [vmem:[#allocation2 + $0x250] sm:$0xff] }
  0x82   :  { %526 = vmatmul.f32.gmra.mxu2 %v104_v6  ;;  %639 = vmatmul.f32.gmra.mxu3 %v105_v7  ;;  %v137_v6 = vld [vmem:[#allocation2 + $0x258] sm:$0xff] }
  0x89   :  { %303 = vmatmul.f32.gmra.mxu0 %v106_v12  ;;  %416 = vmatmul.f32.gmra.mxu1 %v107_v13 }
  0x8a   :  { %529 = vmatmul.f32.gmra.mxu2 %v108_v14  ;;  %642 = vmatmul.f32.gmra.mxu3 %v109_v15 }
  0x91   :  { %306 = vmatmul.f32.gmra.mxu0 %v110_v16  ;;  %419 = vmatmul.f32.gmra.mxu1 %v111_v17  ;;  %v138_v16 = vld [vmem:[#allocation2 + $0x260] sm:$0xff]  ;;  %v139_v17 = vld [vmem:[#allocation2 + $0x268] sm:$0xff] }
  0x92   :  { %532 = vmatmul.f32.gmra.mxu2 %v112_v18  ;;  %645 = vmatmul.f32.gmra.mxu3 %v113_v19  ;;  %v140_v18 = vld [vmem:[#allocation2 + $0x270] sm:$0xff]  ;;  %v141_v19 = vld [vmem:[#allocation2 + $0x278] sm:$0xff] }
  0x99   :  { %309 = vmatmul.f32.gmra.mxu0 %v114_v22  ;;  %422 = vmatmul.f32.gmra.mxu1 %v115_v23  ;;  %v754_v22 = vld [vmem:[#allocation7 + $0x80] sm:$0xff]  ;;  %v755_v23 = vld [vmem:[#allocation7 + $0x88] sm:$0xff] }
  0x9a   :  { %535 = vmatmul.f32.gmra.mxu2 %v116_v24  ;;  %648 = vmatmul.f32.gmra.mxu3 %v117_v25 }
  0x9b   :  { %813 = vmatpush.msrb.mxu0 %v754_v22  ;;  %926 = vmatpush.msrb.mxu1 %v755_v23  ;;  %v160_v22 = vld [vmem:[#allocation2 + $0x310] sm:$0xff]  ;;  %v161_v23 = vld [vmem:[#allocation2 + $0x318] sm:$0xff] }
  0x9d   :  { %814 = vmatpush.msrb.mxu0 %v750_v48  ;;  %v166_v48 = vld [vmem:[#allocation2 + $0x340] sm:$0xff] }
  0xa1   :  { %312 = vmatmul.f32.gmra.mxu0 %v118_v28  ;;  %425 = vmatmul.f32.gmra.mxu1 %v119_v29  ;;  %v142_v29 = vld [vmem:[#allocation2 + $0x280] sm:$0xff] }
  0xa2   :  { %538 = vmatmul.f32.gmra.mxu2 %v120_v30  ;;  %651 = vmatmul.f32.gmra.mxu3 %v121_v31  ;;  %v143_v30 = vld [vmem:[#allocation2 + $0x288] sm:$0xff]  ;;  %v144_v31 = vld [vmem:[#allocation2 + $0x290] sm:$0xff] }
  0xa9   :  { %315 = vmatmul.f32.gmra.mxu0 %v122_v34  ;;  %428 = vmatmul.f32.gmra.mxu1 %v123_v35  ;;  %v752_v35 = vld [vmem:[#allocation7 + $0x70] sm:$0xff] }
  0xaa   :  { %541 = vmatmul.f32.gmra.mxu2 %v124_v36  ;;  %654 = vmatmul.f32.gmra.mxu3 %v125_v37  ;;  %v753_v36 = vld [vmem:[#allocation7 + $0x78] sm:$0xff] }
  0xab   :  { %1040 = vmatpush.msrb.mxu2 %v752_v35  ;;  %1153 = vmatpush.msrb.mxu3 %v753_v36  ;;  %v163_v35 = vld [vmem:[#allocation2 + $0x328] sm:$0xff]  ;;  %v164_v36 = vld [vmem:[#allocation2 + $0x330] sm:$0xff] }
  0xad   :  { %v271_v40 = vpop.f32.mrf.mxu0 }
  0xae   :  { %v384_v41 = vpop.f32.mrf.mxu1 }
  0xaf   :  { %v385_v46 = vadd.f32 %v384_v41, %v271_v40 }
  0xb1   :  { %318 = vmatmul.f32.gmra.mxu0 %v126_v42  ;;  %431 = vmatmul.f32.gmra.mxu1 %v127_v43  ;;  %v146_v42 = vld [vmem:[#allocation2 + $0x2a0] sm:$0xff]  ;;  %v147_v43 = vld [vmem:[#allocation2 + $0x2a8] sm:$0xff] }
  0xb2   :  { %544 = vmatmul.f32.gmra.mxu2 %v128_v44  ;;  %657 = vmatmul.f32.gmra.mxu3 %v129_v45  ;;  %v148_v44 = vld [vmem:[#allocation2 + $0x2b0] sm:$0xff]  ;;  %v149_v45 = vld [vmem:[#allocation2 + $0x2b8] sm:$0xff] }
  0xb5   :  { %v497_v49 = vpop.f32.mrf.mxu2  ;;  %v610_v50 = vpop.f32.mrf.mxu3 }
  0xb6   :  { %v498_v51 = vadd.f32 %v497_v49, %v385_v46  ;;  %v274_v52 = vpop.f32.mrf.mxu0  ;;  %v387_v53 = vpop.f32.mrf.mxu1  ;;  %v751_v49 = vld [vmem:[#allocation7 + $0x68] sm:$0xff] }
  0xb7   :  { %v388_v59 = vadd.f32 %v387_v53, %v274_v52  ;;  %927 = vmatpush.msrb.mxu1 %v751_v49  ;;  %v167_v49 = vld [vmem:[#allocation2 + $0x348] sm:$0xff] }
  0xb8   :  { %v1683_v58 = vadd.f32 %v610_v50, %v498_v51 }
  0xb9   :  { %321 = vmatmul.f32.gmra.mxu0 %v130_v54  ;;  %434 = vmatmul.f32.gmra.mxu1 %v131_v55  ;;  %v150_v55 = vld [vmem:[#allocation2 + $0x2c0] sm:$0xff] }
  0xba   :  { %547 = vmatmul.f32.gmra.mxu2 %v132_v56  ;;  %660 = vmatmul.f32.gmra.mxu3 %v133_v57  ;;  %v151_v56 = vld [vmem:[#allocation2 + $0x2c8] sm:$0xff]  ;;  %v152_v57 = vld [vmem:[#allocation2 + $0x2d0] sm:$0xff] }
  0xbd   :  { %v500_v62 = vpop.f32.mrf.mxu2  ;;  %v613_v63 = vpop.f32.mrf.mxu3 }
  0xbe   :  { %v501_v0 = vadd.f32 %v500_v62, %v388_v59  ;;  %v277_v1 = vpop.f32.mrf.mxu0  ;;  %v390_v2 = vpop.f32.mrf.mxu1  ;;  %v153_v59 = vld [vmem:[#allocation2 + $0x2d8] sm:$0xff]  ;;  %v748_v62 = vld [vmem:[#allocation7 + $0x50] sm:$0xff] }
  0xbf   :  { %v391_v8 = vadd.f32 %v390_v2, %v277_v1  ;;  %1041 = vmatpush.msrb.mxu2 %v748_v62 }
  0xc0   :  { %v1685_v7 = vadd.f32 %v613_v63, %v501_v0  ;;  %v749_v63 = vld [vmem:[#allocation7 + $0x58] sm:$0xff] }
  0xc1   :  { %324 = vmatmul.f32.gmra.mxu0 %v134_v3  ;;  %437 = vmatmul.f32.gmra.mxu1 %v135_v4 }
  0xc2   :  { %550 = vmatmul.f32.gmra.mxu2 %v136_v5  ;;  %663 = vmatmul.f32.gmra.mxu3 %v137_v6  ;;  %v154_v5 = vld [vmem:[#allocation2 + $0x2e0] sm:$0xff]  ;;  %v155_v6 = vld [vmem:[#allocation2 + $0x2e8] sm:$0xff] }
  0xc3   :  { %1154 = vmatpush.msrb.mxu3 %v749_v63  ;;  %v170_v63 = vld [vmem:[#allocation2 + $0x360] sm:$0xff] }
  0xc5   :  { %v503_v11 = vpop.f32.mrf.mxu2  ;;  %v616_v12 = vpop.f32.mrf.mxu3 }
  0xc6   :  { %v504_v13 = vadd.f32 %v503_v11, %v391_v8  ;;  %v280_v14 = vpop.f32.mrf.mxu0  ;;  %v393_v15 = vpop.f32.mrf.mxu1  ;;  %v156_v8 = vld [vmem:[#allocation2 + $0x2f0] sm:$0xff] }
  0xc7   :  { %v394_v21 = vadd.f32 %v393_v15, %v280_v14 }
  0xc8   :  { %v1687_v20 = vadd.f32 %v616_v12, %v504_v13  ;;  %v746_v12 = vld [vmem:[#allocation7 + $0x40] sm:$0xff]  ;;  %v747_v13 = vld [vmem:[#allocation7 + $0x48] sm:$0xff] }
  0xc9   :  { %327 = vmatmul.f32.gmra.mxu0 %v138_v16  ;;  %440 = vmatmul.f32.gmra.mxu1 %v139_v17 }
  0xca   :  { %553 = vmatmul.f32.gmra.mxu2 %v140_v18  ;;  %666 = vmatmul.f32.gmra.mxu3 %v141_v19  ;;  %v158_v19 = vld [vmem:[#allocation2 + $0x300] sm:$0xff] }
  0xcb   :  { %815 = vmatpush.msrb.mxu0 %v746_v12  ;;  %928 = vmatpush.msrb.mxu1 %v747_v13 }
  0xcd   :  { %v506_v24 = vpop.f32.mrf.mxu2  ;;  %v619_v25 = vpop.f32.mrf.mxu3 }
  0xce   :  { %v507_v26 = vadd.f32 %v506_v24, %v394_v21  ;;  %v283_v27 = vpop.f32.mrf.mxu0  ;;  %v396_v28 = vpop.f32.mrf.mxu1  ;;  %v159_v21 = vld [vmem:[#allocation2 + $0x308] sm:$0xff] }
  0xcf   :  { %v397_v34 = vadd.f32 %v396_v28, %v283_v27  ;;  %v745_v27 = vld [vmem:[#allocation7 + $0x38] sm:$0xff] }
  0xd0   :  { %v1689_v33 = vadd.f32 %v619_v25, %v507_v26  ;;  %v744_v26 = vld [vmem:[#allocation7 + $0x30] sm:$0xff]  ;;  %1155 = vmatpush.msrb.mxu3 %v745_v27  ;;  %v178_v27 = vld [vmem:[#allocation2 + $0x3a0] sm:$0xff] }
  0xd1   :  { %330 = vmatmul.f32.gmra.mxu0 %v142_v29  ;;  %443 = vmatmul.f32.gmra.mxu1 %v143_v30 }
  0xd2   :  { %556 = vmatmul.f32.gmra.mxu2 %v144_v31  ;;  %669 = vmatmul.f32.gmra.mxu3 %v145_v32 }
  0xd3   :  { %1042 = vmatpush.msrb.mxu2 %v744_v26 }
  0xd5   :  { %v509_v37 = vpop.f32.mrf.mxu2  ;;  %v622_v38 = vpop.f32.mrf.mxu3 }
  0xd6   :  { %v510_v39 = vadd.f32 %v509_v37, %v397_v34  ;;  %v286_v40 = vpop.f32.mrf.mxu0  ;;  %v399_v41 = vpop.f32.mrf.mxu1  ;;  %v162_v34 = vld [vmem:[#allocation2 + $0x320] sm:$0xff]  ;;  %v165_v37 = vld [vmem:[#allocation2 + $0x338] sm:$0xff] }
  0xd7   :  { %v400_v47 = vadd.f32 %v399_v41, %v286_v40  ;;  %v742_v40 = vld [vmem:[#allocation7 + $0x20] sm:$0xff]  ;;  %v743_v41 = vld [vmem:[#allocation7 + $0x28] sm:$0xff] }
  0xd8   :  { %v1691_v46 = vadd.f32 %v622_v38, %v510_v39  ;;  %816 = vmatpush.msrb.mxu0 %v742_v40  ;;  %929 = vmatpush.msrb.mxu1 %v743_v41  ;;  %v182_v40 = vld [vmem:[#allocation2 + $0x3c0] sm:$0xff]  ;;  %v183_v41 = vld [vmem:[#allocation2 + $0x3c8] sm:$0xff] }
  0xd9   :  { %333 = vmatmul.f32.gmra.mxu0 %v146_v42  ;;  %446 = vmatmul.f32.gmra.mxu1 %v147_v43 }
  0xda   :  { %559 = vmatmul.f32.gmra.mxu2 %v148_v44  ;;  %672 = vmatmul.f32.gmra.mxu3 %v149_v45 }
  0xdd   :  { %v512_v50 = vpop.f32.mrf.mxu2  ;;  %v625_v51 = vpop.f32.mrf.mxu3 }
  0xde   :  { %v513_v52 = vadd.f32 %v512_v50, %v400_v47  ;;  %v289_v53 = vpop.f32.mrf.mxu0  ;;  %v402_v54 = vpop.f32.mrf.mxu1  ;;  %v168_v50 = vld [vmem:[#allocation2 + $0x350] sm:$0xff] }
  0xdf   :  { %v403_v61 = vadd.f32 %v402_v54, %v289_v53  ;;  %v740_v54 = vld [vmem:[#allocation7 + $0x10] sm:$0xff] }
  0xe0   :  { %v1693_v60 = vadd.f32 %v625_v51, %v513_v52  ;;  %v169_v51 = vld [vmem:[#allocation2 + $0x358] sm:$0xff]  ;;  %1043 = vmatpush.msrb.mxu2 %v740_v54  ;;  %v187_v54 = vld [vmem:[#allocation2 + $0x3e8] sm:$0xff] }
  0xe1   :  { %336 = vmatmul.f32.gmra.mxu0 %v150_v55  ;;  %449 = vmatmul.f32.gmra.mxu1 %v151_v56  ;;  %v741_v55 = vld [vmem:[#allocation7 + $0x18] sm:$0xff] }
  0xe2   :  { %562 = vmatmul.f32.gmra.mxu2 %v152_v57  ;;  %675 = vmatmul.f32.gmra.mxu3 %v153_v59 }
  0xe3   :  { %1156 = vmatpush.msrb.mxu3 %v741_v55  ;;  %v188_v55 = vld [vmem:[#allocation2 + $0x3f0] sm:$0xff] }
  0xe5   :  { %v515_v0 = vpop.f32.mrf.mxu2  ;;  %v628_v1 = vpop.f32.mrf.mxu3 }
  0xe6   :  { %v516_v2 = vadd.f32 %v515_v0, %v403_v61  ;;  %v292_v3 = vpop.f32.mrf.mxu0  ;;  %v405_v4 = vpop.f32.mrf.mxu1  ;;  %v171_v0 = vld [vmem:[#allocation2 + $0x368] sm:$0xff] }
  0xe7   :  { %v406_v11 = vadd.f32 %v405_v4, %v292_v3 }
  0xe8   :  { %v1695_v10 = vadd.f32 %v628_v1, %v516_v2  ;;  %v172_v1 = vld [vmem:[#allocation2 + $0x370] sm:$0xff]  ;;  %v173_v2 = vld [vmem:[#allocation2 + $0x378] sm:$0xff] }
  0xe9   :  { %339 = vmatmul.f32.gmra.mxu0 %v154_v5  ;;  %452 = vmatmul.f32.gmra.mxu1 %v155_v6  ;;  %v738_v5 = vld [vmem:[#allocation7] sm:$0xff]  ;;  %v739_v6 = vld [vmem:[#allocation7 + $0x8] sm:$0xff] }
  0xea   :  { %565 = vmatmul.f32.gmra.mxu2 %v156_v8  ;;  %678 = vmatmul.f32.gmra.mxu3 %v157_v9 }
  0xeb   :  { %817 = vmatpush.msrb.mxu0 %v738_v5  ;;  %930 = vmatpush.msrb.mxu1 %v739_v6 }
  0xed   :  { %v518_v14 = vpop.f32.mrf.mxu2  ;;  %v631_v15 = vpop.f32.mrf.mxu3 }
  0xee   :  { %v519_v16 = vadd.f32 %v518_v14, %v406_v11  ;;  %v295_v17 = vpop.f32.mrf.mxu0  ;;  %v408_v18 = vpop.f32.mrf.mxu1  ;;  %v174_v14 = vld [vmem:[#allocation2 + $0x380] sm:$0xff] }
  0xef   :  { %v409_v25 = vadd.f32 %v408_v18, %v295_v17  ;;  %v177_v17 = vld [vmem:[#allocation2 + $0x398] sm:$0xff] }
  0xf0   :  { %v1697_v24 = vadd.f32 %v631_v15, %v519_v16  ;;  %v175_v15 = vld [vmem:[#allocation2 + $0x388] sm:$0xff]  ;;  %v176_v16 = vld [vmem:[#allocation2 + $0x390] sm:$0xff] }
  0xf1   :  { %342 = vmatmul.f32.gmra.mxu0 %v158_v19  ;;  %455 = vmatmul.f32.gmra.mxu1 %v159_v21 }
  0xf2   :  { %568 = vmatmul.f32.gmra.mxu2 %v160_v22  ;;  %681 = vmatmul.f32.gmra.mxu3 %v161_v23 }
  0xf5   :  { %v521_v28 = vpop.f32.mrf.mxu2  ;;  %v634_v29 = vpop.f32.mrf.mxu3 }
  0xf6   :  { %v522_v30 = vadd.f32 %v521_v28, %v409_v25  ;;  %v298_v31 = vpop.f32.mrf.mxu0  ;;  %v411_v32 = vpop.f32.mrf.mxu1  ;;  %v179_v28 = vld [vmem:[#allocation2 + $0x3a8] sm:$0xff] }
  0xf7   :  { %v412_v39 = vadd.f32 %v411_v32, %v298_v31 }
  0xf8   :  { %v1699_v38 = vadd.f32 %v634_v29, %v522_v30  ;;  %v180_v29 = vld [vmem:[#allocation2 + $0x3b0] sm:$0xff]  ;;  %v181_v30 = vld [vmem:[#allocation2 + $0x3b8] sm:$0xff] }
  0xf9   :  { %345 = vmatmul.f32.gmra.mxu0 %v162_v34  ;;  %458 = vmatmul.f32.gmra.mxu1 %v163_v35 }
  0xfa   :  { %571 = vmatmul.f32.gmra.mxu2 %v164_v36  ;;  %684 = vmatmul.f32.gmra.mxu3 %v165_v37 }
  0xfd   :  { %v524_v42 = vpop.f32.mrf.mxu2  ;;  %v637_v43 = vpop.f32.mrf.mxu3 }
  0xfe   :  { %v525_v44 = vadd.f32 %v524_v42, %v412_v39  ;;  %v301_v45 = vpop.f32.mrf.mxu0  ;;  %v414_v47 = vpop.f32.mrf.mxu1  ;;  %v184_v42 = vld [vmem:[#allocation2 + $0x3d0] sm:$0xff] }
  0xff   :  { %v415_v53 = vadd.f32 %v414_v47, %v301_v45 }
 0x100   :  { %v1701_v52 = vadd.f32 %v637_v43, %v525_v44  ;;  %v185_v43 = vld [vmem:[#allocation2 + $0x3d8] sm:$0xff] }
 0x101   :  { %348 = vmatmul.f32.gmra.mxu0 %v166_v48  ;;  %461 = vmatmul.f32.gmra.mxu1 %v167_v49 }
 0x102   :  { %574 = vmatmul.f32.gmra.mxu2 %v168_v50  ;;  %687 = vmatmul.f32.gmra.mxu3 %v169_v51 }
 0x105   :  { %v527_v56 = vpop.f32.mrf.mxu2  ;;  %v640_v57 = vpop.f32.mrf.mxu3 }
 0x106   :  { %v528_v59 = vadd.f32 %v527_v56, %v415_v53  ;;  %v304_v61 = vpop.f32.mrf.mxu0  ;;  %v417_v62 = vpop.f32.mrf.mxu1  ;;  %v186_v53 = vld [vmem:[#allocation2 + $0x3e0] sm:$0xff]  ;;  %v189_v56 = vld [vmem:[#allocation2 + $0x3f8] sm:$0xff] }
 0x107   :  { %v418_v4 = vadd.f32 %v417_v62, %v304_v61 }
 0x108   :  { %v1703_v3 = vadd.f32 %v640_v57, %v528_v59 }
 0x109   :  { %351 = vmatmul.f32.gmra.mxu0 %v170_v63  ;;  %464 = vmatmul.f32.gmra.mxu1 %v171_v0 }
 0x10a   :  { %577 = vmatmul.f32.gmra.mxu2 %v172_v1  ;;  %690 = vmatmul.f32.gmra.mxu3 %v173_v2  ;;  %v706_v2 = vmax.f32 %v1683_v58, 0.0 }
 0x10d   :  { %v530_v8 = vpop.f32.mrf.mxu2  ;;  %v643_v9 = vpop.f32.mrf.mxu3 }
 0x10e   :  { %v531_v11 = vadd.f32 %v530_v8, %v418_v4  ;;  %v307_v12 = vpop.f32.mrf.mxu0  ;;  %v420_v13 = vpop.f32.mrf.mxu1 }
 0x10f   :  { %v421_v19 = vadd.f32 %v420_v13, %v307_v12  ;;  %v707_v13 = vmax.f32 %v1685_v7, 0.0 }
 0x110   :  { %v1705_v18 = vadd.f32 %v643_v9, %v531_v11 }
 0x111   :  { %354 = vmatmul.f32.gmra.mxu0 %v174_v14  ;;  %467 = vmatmul.f32.gmra.mxu1 %v175_v15 }
 0x112   :  { %580 = vmatmul.f32.gmra.mxu2 %v176_v16  ;;  %693 = vmatmul.f32.gmra.mxu3 %v177_v17 }
 0x115   :  { %v533_v21 = vpop.f32.mrf.mxu2  ;;  %v646_v22 = vpop.f32.mrf.mxu3 }
 0x116   :  { %v534_v23 = vadd.f32 %v533_v21, %v421_v19  ;;  %v310_v25 = vpop.f32.mrf.mxu0  ;;  %v423_v26 = vpop.f32.mrf.mxu1 }
 0x117   :  { %v424_v32 = vadd.f32 %v423_v26, %v310_v25 }
 0x118   :  { %v1707_v31 = vadd.f32 %v646_v22, %v534_v23  ;;  %v708_v22 = vmax.f32 %v1687_v20, 0.0 }
 0x119   :  { %357 = vmatmul.f32.gmra.mxu0 %v178_v27  ;;  %470 = vmatmul.f32.gmra.mxu1 %v179_v28 }
 0x11a   :  { %583 = vmatmul.f32.gmra.mxu2 %v180_v29  ;;  %696 = vmatmul.f32.gmra.mxu3 %v181_v30  ;;  %v709_v30 = vmax.f32 %v1689_v33, 0.0 }
 0x11d   :  { %v536_v34 = vpop.f32.mrf.mxu2  ;;  %v649_v35 = vpop.f32.mrf.mxu3 }
 0x11e   :  { %v537_v36 = vadd.f32 %v536_v34, %v424_v32  ;;  %v313_v37 = vpop.f32.mrf.mxu0  ;;  %v426_v39 = vpop.f32.mrf.mxu1 }
 0x11f   :  { %v427_v45 = vadd.f32 %v426_v39, %v313_v37 }
 0x120   :  { %v1709_v44 = vadd.f32 %v649_v35, %v537_v36 }
 0x121   :  { %360 = vmatmul.f32.gmra.mxu0 %v182_v40  ;;  %473 = vmatmul.f32.gmra.mxu1 %v183_v41  ;;  %v710_v40 = vmax.f32 %v1691_v46, 0.0 }
 0x122   :  { %586 = vmatmul.f32.gmra.mxu2 %v184_v42  ;;  %699 = vmatmul.f32.gmra.mxu3 %v185_v43 }
 0x125   :  { %v539_v47 = vpop.f32.mrf.mxu2  ;;  %v652_v48 = vpop.f32.mrf.mxu3 }
 0x126   :  { %v540_v49 = vadd.f32 %v539_v47, %v427_v45  ;;  %v316_v50 = vpop.f32.mrf.mxu0  ;;  %v429_v51 = vpop.f32.mrf.mxu1 }
 0x127   :  { %v430_v59 = vadd.f32 %v429_v51, %v316_v50 }
 0x128   :  { %v1711_v57 = vadd.f32 %v652_v48, %v540_v49  ;;  %v711_v49 = vmax.f32 %v1693_v60, 0.0 }
 0x129   :  { %363 = vmatmul.f32.gmra.mxu0 %v186_v53  ;;  %476 = vmatmul.f32.gmra.mxu1 %v187_v54 }
 0x12a   :  { %589 = vmatmul.f32.gmra.mxu2 %v188_v55  ;;  %702 = vmatmul.f32.gmra.mxu3 %v189_v56 }
 0x12d   :  { %v542_v61 = vpop.f32.mrf.mxu2  ;;  %v655_v62 = vpop.f32.mrf.mxu3 }
 0x12e   :  { %v543_v63 = vadd.f32 %v542_v61, %v430_v59  ;;  %v319_v0 = vpop.f32.mrf.mxu0  ;;  %v432_v1 = vpop.f32.mrf.mxu1  ;;  %v712_v59 = vmax.f32 %v1695_v10, 0.0 }
 0x12f   :  { %v433_v5 = vadd.f32 %v432_v1, %v319_v0 }
 0x130   :  { %v1714_v4 = vadd.f32 %v655_v62, %v543_v63 }
 0x131   :  { %818 = vmatmul.f32.vlgmr.msrb.gmra.mxu0 %v706_v2  ;;  %931 = vmatmul.f32.vlgmr.msrb.gmra.mxu1 %v706_v2 }
 0x132   :  { %1044 = vmatmul.f32.vlgmr.msrb.gmra.mxu2 %v706_v2  ;;  %1157 = vmatmul.f32.vlgmr.msrb.gmra.mxu3 %v706_v2 }
 0x135   :  { %v545_v6 = vpop.f32.mrf.mxu2  ;;  %v658_v8 = vpop.f32.mrf.mxu3 }
 0x136   :  { %v546_v9 = vadd.f32 %v545_v6, %v433_v5  ;;  %v322_v11 = vpop.f32.mrf.mxu0  ;;  %v435_v12 = vpop.f32.mrf.mxu1  ;;  %v713_v5 = vmax.f32 %v1697_v24, 0.0 }
 0x137   :  { %v436_v15 = vadd.f32 %v435_v12, %v322_v11 }
 0x138   :  { %v1717_v14 = vadd.f32 %v658_v8, %v546_v9 }
 0x139   :  { %821 = vmatmul.f32.gmra.mxu0 %v707_v13  ;;  %934 = vmatmul.f32.gmra.mxu1 %v707_v13 }
 0x13a   :  { %1047 = vmatmul.f32.gmra.mxu2 %v707_v13  ;;  %1160 = vmatmul.f32.gmra.mxu3 %v707_v13 }
 0x13d   :  { %v548_v58 = vpop.f32.mrf.mxu2  ;;  %v661_v16 = vpop.f32.mrf.mxu3 }
 0x13e   :  { %v549_v17 = vadd.f32 %v548_v58, %v436_v15  ;;  %v325_v19 = vpop.f32.mrf.mxu0  ;;  %v438_v21 = vpop.f32.mrf.mxu1  ;;  %v714_v15 = vmax.f32 %v1699_v38, 0.0 }
 0x13f   :  { %v439_v25 = vadd.f32 %v438_v21, %v325_v19 }
 0x140   :  { %v1720_v23 = vadd.f32 %v661_v16, %v549_v17 }
 0x141   :  { %824 = vmatmul.f32.gmra.mxu0 %v708_v22  ;;  %937 = vmatmul.f32.gmra.mxu1 %v708_v22 }
 0x142   :  { %1050 = vmatmul.f32.gmra.mxu2 %v708_v22  ;;  %1163 = vmatmul.f32.gmra.mxu3 %v708_v22 }
 0x145   :  { %v551_v7 = vpop.f32.mrf.mxu2  ;;  %v664_v26 = vpop.f32.mrf.mxu3 }
 0x146   :  { %v552_v27 = vadd.f32 %v551_v7, %v439_v25  ;;  %v328_v28 = vpop.f32.mrf.mxu0  ;;  %v441_v29 = vpop.f32.mrf.mxu1  ;;  %v715_v25 = vmax.f32 %v1701_v52, 0.0 }
 0x147   :  { %v442_v34 = vadd.f32 %v441_v29, %v328_v28 }
 0x148   :  { %v1723_v32 = vadd.f32 %v664_v26, %v552_v27 }
 0x149   :  { %827 = vmatmul.f32.gmra.mxu0 %v709_v30  ;;  %940 = vmatmul.f32.gmra.mxu1 %v709_v30 }
 0x14a   :  { %1053 = vmatmul.f32.gmra.mxu2 %v709_v30  ;;  %1166 = vmatmul.f32.gmra.mxu3 %v709_v30 }
 0x14d   :  { %v554_v20 = vpop.f32.mrf.mxu2  ;;  %v667_v35 = vpop.f32.mrf.mxu3 }
 0x14e   :  { %v555_v36 = vadd.f32 %v554_v20, %v442_v34  ;;  %v331_v37 = vpop.f32.mrf.mxu0  ;;  %v444_v39 = vpop.f32.mrf.mxu1  ;;  %v716_v34 = vmax.f32 %v1703_v3, 0.0 }
 0x14f   :  { %v445_v42 = vadd.f32 %v444_v39, %v331_v37 }
 0x150   :  { %v1726_v41 = vadd.f32 %v667_v35, %v555_v36 }
 0x151   :  { %830 = vmatmul.f32.gmra.mxu0 %v710_v40  ;;  %943 = vmatmul.f32.gmra.mxu1 %v710_v40 }
 0x152   :  { %1056 = vmatmul.f32.gmra.mxu2 %v710_v40  ;;  %1169 = vmatmul.f32.gmra.mxu3 %v710_v40 }
 0x155   :  { %v557_v33 = vpop.f32.mrf.mxu2  ;;  %v670_v43 = vpop.f32.mrf.mxu3 }
 0x156   :  { %v558_v45 = vadd.f32 %v557_v33, %v445_v42  ;;  %v334_v47 = vpop.f32.mrf.mxu0  ;;  %v447_v48 = vpop.f32.mrf.mxu1  ;;  %v717_v42 = vmax.f32 %v1705_v18, 0.0 }
 0x157   :  { %v448_v51 = vadd.f32 %v447_v48, %v334_v47 }
 0x158   :  { %v1729_v50 = vadd.f32 %v670_v43, %v558_v45 }
 0x159   :  { %833 = vmatmul.f32.gmra.mxu0 %v711_v49  ;;  %946 = vmatmul.f32.gmra.mxu1 %v711_v49 }
 0x15a   :  { %1059 = vmatmul.f32.gmra.mxu2 %v711_v49  ;;  %1172 = vmatmul.f32.gmra.mxu3 %v711_v49 }
 0x15d   :  { %v560_v46 = vpop.f32.mrf.mxu2  ;;  %v673_v53 = vpop.f32.mrf.mxu3 }
 0x15e   :  { %v561_v54 = vadd.f32 %v560_v46, %v448_v51  ;;  %v337_v55 = vpop.f32.mrf.mxu0  ;;  %v450_v56 = vpop.f32.mrf.mxu1  ;;  %v718_v51 = vmax.f32 %v1707_v31, 0.0 }
 0x15f   :  { %v451_v62 = vadd.f32 %v450_v56, %v337_v55 }
 0x160   :  { %v1732_v61 = vadd.f32 %v673_v53, %v561_v54 }
 0x161   :  { %836 = vmatmul.f32.gmra.mxu0 %v712_v59  ;;  %949 = vmatmul.f32.gmra.mxu1 %v712_v59 }
 0x162   :  { %1062 = vmatmul.f32.gmra.mxu2 %v712_v59  ;;  %1175 = vmatmul.f32.gmra.mxu3 %v712_v59 }
 0x165   :  { %v563_v60 = vpop.f32.mrf.mxu2  ;;  %v676_v63 = vpop.f32.mrf.mxu3 }
 0x166   :  { %v564_v0 = vadd.f32 %v563_v60, %v451_v62  ;;  %v340_v1 = vpop.f32.mrf.mxu0  ;;  %v453_v2 = vpop.f32.mrf.mxu1  ;;  %v719_v62 = vmax.f32 %v1709_v44, 0.0 }
 0x167   :  { %v454_v8 = vadd.f32 %v453_v2, %v340_v1 }
 0x168   :  { %v1735_v6 = vadd.f32 %v676_v63, %v564_v0 }
 0x169   :  { %839 = vmatmul.f32.gmra.mxu0 %v713_v5  ;;  %952 = vmatmul.f32.gmra.mxu1 %v713_v5 }
 0x16a   :  { %1065 = vmatmul.f32.gmra.mxu2 %v713_v5  ;;  %1178 = vmatmul.f32.gmra.mxu3 %v713_v5 }
 0x16d   :  { %v566_v10 = vpop.f32.mrf.mxu2  ;;  %v679_v9 = vpop.f32.mrf.mxu3 }
 0x16e   :  { %v567_v11 = vadd.f32 %v566_v10, %v454_v8  ;;  %v343_v12 = vpop.f32.mrf.mxu0  ;;  %v456_v13 = vpop.f32.mrf.mxu1  ;;  %v720_v8 = vmax.f32 %v1711_v57, 0.0 }
 0x16f   :  { %v457_v16 = vadd.f32 %v456_v13, %v343_v12 }
 0x170   :  { %v1738_v58 = vadd.f32 %v679_v9, %v567_v11 }
 0x171   :  { %842 = vmatmul.f32.gmra.mxu0 %v714_v15  ;;  %955 = vmatmul.f32.gmra.mxu1 %v714_v15 }
 0x172   :  { %1068 = vmatmul.f32.gmra.mxu2 %v714_v15  ;;  %1181 = vmatmul.f32.gmra.mxu3 %v714_v15 }
 0x175   :  { %v569_v24 = vpop.f32.mrf.mxu2  ;;  %v682_v17 = vpop.f32.mrf.mxu3 }
 0x176   :  { %v570_v19 = vadd.f32 %v569_v24, %v457_v16  ;;  %v346_v21 = vpop.f32.mrf.mxu0  ;;  %v459_v22 = vpop.f32.mrf.mxu1  ;;  %v721_v16 = vmax.f32 %v1714_v4, 0.0 }
 0x177   :  { %v460_v26 = vadd.f32 %v459_v22, %v346_v21 }
 0x178   :  { %v1741_v7 = vadd.f32 %v682_v17, %v570_v19 }
 0x179   :  { %845 = vmatmul.f32.gmra.mxu0 %v715_v25  ;;  %958 = vmatmul.f32.gmra.mxu1 %v715_v25 }
 0x17a   :  { %1071 = vmatmul.f32.gmra.mxu2 %v715_v25  ;;  %1184 = vmatmul.f32.gmra.mxu3 %v715_v25 }
 0x17d   :  { %v572_v38 = vpop.f32.mrf.mxu2  ;;  %v685_v27 = vpop.f32.mrf.mxu3 }
 0x17e   :  { %v573_v28 = vadd.f32 %v572_v38, %v460_v26  ;;  %v349_v29 = vpop.f32.mrf.mxu0  ;;  %v462_v30 = vpop.f32.mrf.mxu1  ;;  %v722_v26 = vmax.f32 %v1717_v14, 0.0 }
 0x17f   :  { %v463_v35 = vadd.f32 %v462_v30, %v349_v29 }
 0x180   :  { %v1744_v20 = vadd.f32 %v685_v27, %v573_v28 }
 0x181   :  { %848 = vmatmul.f32.gmra.mxu0 %v716_v34  ;;  %961 = vmatmul.f32.gmra.mxu1 %v716_v34 }
 0x182   :  { %1074 = vmatmul.f32.gmra.mxu2 %v716_v34  ;;  %1187 = vmatmul.f32.gmra.mxu3 %v716_v34 }
 0x185   :  { %v575_v52 = vpop.f32.mrf.mxu2  ;;  %v688_v36 = vpop.f32.mrf.mxu3 }
 0x186   :  { %v576_v37 = vadd.f32 %v575_v52, %v463_v35  ;;  %v352_v39 = vpop.f32.mrf.mxu0  ;;  %v465_v40 = vpop.f32.mrf.mxu1 }
 0x187   :  { %v466_v43 = vadd.f32 %v465_v40, %v352_v39 }
 0x188   :  { %v1747_v33 = vadd.f32 %v688_v36, %v576_v37  ;;  %v723_v36 = vmax.f32 %v1720_v23, 0.0 }
 0x189   :  { %851 = vmatmul.f32.gmra.mxu0 %v717_v42  ;;  %964 = vmatmul.f32.gmra.mxu1 %v717_v42 }
 0x18a   :  { %1077 = vmatmul.f32.gmra.mxu2 %v717_v42  ;;  %1190 = vmatmul.f32.gmra.mxu3 %v717_v42 }
 0x18d   :  { %v578_v3 = vpop.f32.mrf.mxu2  ;;  %v691_v45 = vpop.f32.mrf.mxu3 }
 0x18e   :  { %v579_v47 = vadd.f32 %v578_v3, %v466_v43  ;;  %v355_v48 = vpop.f32.mrf.mxu0  ;;  %v468_v49 = vpop.f32.mrf.mxu1 }
 0x18f   :  { %v469_v53 = vadd.f32 %v468_v49, %v355_v48 }
 0x190   :  { %v1750_v46 = vadd.f32 %v691_v45, %v579_v47  ;;  %v724_v47 = vmax.f32 %v1723_v32, 0.0 }
 0x191   :  { %854 = vmatmul.f32.gmra.mxu0 %v718_v51  ;;  %967 = vmatmul.f32.gmra.mxu1 %v718_v51 }
 0x192   :  { %1080 = vmatmul.f32.gmra.mxu2 %v718_v51  ;;  %1193 = vmatmul.f32.gmra.mxu3 %v718_v51 }
 0x195   :  { %v581_v18 = vpop.f32.mrf.mxu2  ;;  %v694_v54 = vpop.f32.mrf.mxu3 }
 0x196   :  { %v582_v55 = vadd.f32 %v581_v18, %v469_v53  ;;  %v358_v56 = vpop.f32.mrf.mxu0  ;;  %v471_v59 = vpop.f32.mrf.mxu1 }
 0x197   :  { %v472_v63 = vadd.f32 %v471_v59, %v358_v56  ;;  %v725_v56 = vmax.f32 %v1726_v41, 0.0 }
 0x198   :  { %v1753_v60 = vadd.f32 %v694_v54, %v582_v55 }
 0x199   :  { %857 = vmatmul.f32.gmra.mxu0 %v719_v62  ;;  %970 = vmatmul.f32.gmra.mxu1 %v719_v62 }
 0x19a   :  { %1083 = vmatmul.f32.gmra.mxu2 %v719_v62  ;;  %1196 = vmatmul.f32.gmra.mxu3 %v719_v62 }
 0x19d   :  { %v584_v31 = vpop.f32.mrf.mxu2  ;;  %v697_v0 = vpop.f32.mrf.mxu3 }
 0x19e   :  { %v585_v1 = vadd.f32 %v584_v31, %v472_v63  ;;  %v361_v2 = vpop.f32.mrf.mxu0  ;;  %v474_v5 = vpop.f32.mrf.mxu1 }
 0x19f   :  { %v475_v9 = vadd.f32 %v474_v5, %v361_v2  ;;  %v726_v5 = vmax.f32 %v1729_v50, 0.0 }
 0x1a0   :  { %v1756_v10 = vadd.f32 %v697_v0, %v585_v1 }
 0x1a1   :  { %860 = vmatmul.f32.gmra.mxu0 %v720_v8  ;;  %973 = vmatmul.f32.gmra.mxu1 %v720_v8 }
 0x1a2   :  { %1086 = vmatmul.f32.gmra.mxu2 %v720_v8  ;;  %1199 = vmatmul.f32.gmra.mxu3 %v720_v8 }
 0x1a5   :  { %v587_v44 = vpop.f32.mrf.mxu2  ;;  %v700_v11 = vpop.f32.mrf.mxu3 }
 0x1a6   :  { %v588_v12 = vadd.f32 %v587_v44, %v475_v9  ;;  %v364_v13 = vpop.f32.mrf.mxu0  ;;  %v477_v15 = vpop.f32.mrf.mxu1 }
 0x1a7   :  { %v478_v17 = vadd.f32 %v477_v15, %v364_v13 }
 0x1a8   :  { %v1759_v24 = vadd.f32 %v700_v11, %v588_v12 }
 0x1a9   :  { %863 = vmatmul.f32.gmra.mxu0 %v721_v16  ;;  %976 = vmatmul.f32.gmra.mxu1 %v721_v16 }
 0x1aa   :  { %1089 = vmatmul.f32.gmra.mxu2 %v721_v16  ;;  %1202 = vmatmul.f32.gmra.mxu3 %v721_v16  ;;  %v727_v16 = vmax.f32 %v1732_v61, 0.0 }
 0x1ad   :  { %v590_v57 = vpop.f32.mrf.mxu2  ;;  %v703_v19 = vpop.f32.mrf.mxu3 }
 0x1ae   :  { %v591_v21 = vadd.f32 %v590_v57, %v478_v17  ;;  %v819_v22 = vpop.f32.mrf.mxu0  ;;  %v932_v25 = vpop.f32.mrf.mxu1 }
 0x1af   :  { %v1254_v38 = vmax.f32 %v819_v22, 0.0  ;;  %v1255_v27 = vmax.f32 %v932_v25, 0.0 }
 0x1b0   :  { %v1762_v28 = vadd.f32 %v703_v19, %v591_v21 }
 0x1b1   :  { %1382 = vst [vmem:[#allocation8] sm:$0xff] %v1254_v38  ;;  %866 = vmatmul.f32.gmra.mxu0 %v722_v26  ;;  %979 = vmatmul.f32.gmra.mxu1 %v722_v26  ;;  %v728_v38 = vmax.f32 %v1735_v6, 0.0 }
 0x1b2   :  { %1383 = vst [vmem:[#allocation8 + $0x8] sm:$0xff] %v1255_v27  ;;  %1092 = vmatmul.f32.gmra.mxu2 %v722_v26  ;;  %1205 = vmatmul.f32.gmra.mxu3 %v722_v26 }
 0x1b5   :  { %v1045_v4 = vpop.f32.mrf.mxu2  ;;  %v1158_v29 = vpop.f32.mrf.mxu3 }
 0x1b6   :  { %v1256_v30 = vmax.f32 %v1045_v4, 0.0  ;;  %v1257_v34 = vmax.f32 %v1158_v29, 0.0  ;;  %v822_v35 = vpop.f32.mrf.mxu0  ;;  %v935_v52 = vpop.f32.mrf.mxu1 }
 0x1b7   :  { %v1258_v37 = vmax.f32 %v822_v35, 0.0  ;;  %v1259_v14 = vmax.f32 %v935_v52, 0.0 }
 0x1b8   :  { %1384 = vst [vmem:[#allocation8 + $0x10] sm:$0xff] %v1256_v30 }
 0x1b9   :  { %1385 = vst [vmem:[#allocation8 + $0x18] sm:$0xff] %v1257_v34  ;;  %869 = vmatmul.f32.gmra.mxu0 %v723_v36  ;;  %982 = vmatmul.f32.gmra.mxu1 %v723_v36 }
 0x1ba   :  { %1386 = vst [vmem:[#allocation8 + $0x20] sm:$0xff] %v1258_v37  ;;  %1095 = vmatmul.f32.gmra.mxu2 %v723_v36  ;;  %1208 = vmatmul.f32.gmra.mxu3 %v723_v36  ;;  %v729_v36 = vmax.f32 %v1738_v58, 0.0 }
 0x1bb   :  { %1387 = vst [vmem:[#allocation8 + $0x28] sm:$0xff] %v1259_v14 }
 0x1bd   :  { %v1048_v39 = vpop.f32.mrf.mxu2  ;;  %v1161_v40 = vpop.f32.mrf.mxu3 }
 0x1be   :  { %v1260_v42 = vmax.f32 %v1048_v39, 0.0  ;;  %v1261_v43 = vmax.f32 %v1161_v40, 0.0  ;;  %v825_v3 = vpop.f32.mrf.mxu0  ;;  %v938_v45 = vpop.f32.mrf.mxu1 }
 0x1bf   :  { %v1262_v48 = vmax.f32 %v825_v3, 0.0  ;;  %v1263_v23 = vmax.f32 %v938_v45, 0.0  ;;  %v730_v45 = vmax.f32 %v1741_v7, 0.0 }
 0x1c0   :  { %1388 = vst [vmem:[#allocation8 + $0x30] sm:$0xff] %v1260_v42 }
 0x1c1   :  { %1389 = vst [vmem:[#allocation8 + $0x38] sm:$0xff] %v1261_v43  ;;  %872 = vmatmul.f32.gmra.mxu0 %v724_v47  ;;  %985 = vmatmul.f32.gmra.mxu1 %v724_v47 }
 0x1c2   :  { %1390 = vst [vmem:[#allocation8 + $0x40] sm:$0xff] %v1262_v48  ;;  %1098 = vmatmul.f32.gmra.mxu2 %v724_v47  ;;  %1211 = vmatmul.f32.gmra.mxu3 %v724_v47 }
 0x1c3   :  { %1391 = vst [vmem:[#allocation8 + $0x48] sm:$0xff] %v1263_v23 }
 0x1c5   :  { %v1051_v49 = vpop.f32.mrf.mxu2  ;;  %v1164_v51 = vpop.f32.mrf.mxu3 }
 0x1c6   :  { %v1264_v53 = vmax.f32 %v1051_v49, 0.0  ;;  %v1265_v18 = vmax.f32 %v1164_v51, 0.0  ;;  %v828_v54 = vpop.f32.mrf.mxu0  ;;  %v941_v55 = vpop.f32.mrf.mxu1 }
 0x1c7   :  { %v1266_v59 = vmax.f32 %v828_v54, 0.0  ;;  %v1267_v32 = vmax.f32 %v941_v55, 0.0  ;;  %v731_v54 = vmax.f32 %v1744_v20, 0.0 }
 0x1c8   :  { %1392 = vst [vmem:[#allocation8 + $0x50] sm:$0xff] %v1264_v53 }
 0x1c9   :  { %1393 = vst [vmem:[#allocation8 + $0x58] sm:$0xff] %v1265_v18  ;;  %875 = vmatmul.f32.gmra.mxu0 %v725_v56  ;;  %988 = vmatmul.f32.gmra.mxu1 %v725_v56 }
 0x1ca   :  { %1394 = vst [vmem:[#allocation8 + $0x60] sm:$0xff] %v1266_v59  ;;  %1101 = vmatmul.f32.gmra.mxu2 %v725_v56  ;;  %1214 = vmatmul.f32.gmra.mxu3 %v725_v56 }
 0x1cb   :  { %1395 = vst [vmem:[#allocation8 + $0x68] sm:$0xff] %v1267_v32 }
 0x1cd   :  { %v1054_v62 = vpop.f32.mrf.mxu2  ;;  %v1167_v63 = vpop.f32.mrf.mxu3 }
 0x1ce   :  { %v1268_v31 = vmax.f32 %v1054_v62, 0.0  ;;  %v1269_v0 = vmax.f32 %v1167_v63, 0.0  ;;  %v831_v1 = vpop.f32.mrf.mxu0  ;;  %v944_v2 = vpop.f32.mrf.mxu1 }
 0x1cf   :  { %v1270_v8 = vmax.f32 %v831_v1, 0.0  ;;  %v1271_v41 = vmax.f32 %v944_v2, 0.0 }
 0x1d0   :  { %1396 = vst [vmem:[#allocation8 + $0x70] sm:$0xff] %v1268_v31 }
 0x1d1   :  { %1397 = vst [vmem:[#allocation8 + $0x78] sm:$0xff] %v1269_v0  ;;  %878 = vmatmul.f32.gmra.mxu0 %v726_v5  ;;  %991 = vmatmul.f32.gmra.mxu1 %v726_v5  ;;  %v732_v0 = vmax.f32 %v1747_v33, 0.0 }
 0x1d2   :  { %1398 = vst [vmem:[#allocation8 + $0x80] sm:$0xff] %v1270_v8  ;;  %1104 = vmatmul.f32.gmra.mxu2 %v726_v5  ;;  %1217 = vmatmul.f32.gmra.mxu3 %v726_v5 }
 0x1d3   :  { %1399 = vst [vmem:[#allocation8 + $0x88] sm:$0xff] %v1271_v41 }
 0x1d5   :  { %v1057_v9 = vpop.f32.mrf.mxu2  ;;  %v1170_v44 = vpop.f32.mrf.mxu3 }
 0x1d6   :  { %v1272_v11 = vmax.f32 %v1057_v9, 0.0  ;;  %v1273_v12 = vmax.f32 %v1170_v44, 0.0  ;;  %v834_v13 = vpop.f32.mrf.mxu0  ;;  %v947_v15 = vpop.f32.mrf.mxu1 }
 0x1d7   :  { %v1274_v17 = vmax.f32 %v834_v13, 0.0  ;;  %v1275_v50 = vmax.f32 %v947_v15, 0.0 }
 0x1d8   :  { %1400 = vst [vmem:[#allocation8 + $0x90] sm:$0xff] %v1272_v11  ;;  %v733_v11 = vmax.f32 %v1750_v46, 0.0 }
 0x1d9   :  { %1401 = vst [vmem:[#allocation8 + $0x98] sm:$0xff] %v1273_v12  ;;  %881 = vmatmul.f32.gmra.mxu0 %v727_v16  ;;  %994 = vmatmul.f32.gmra.mxu1 %v727_v16 }
 0x1da   :  { %1402 = vst [vmem:[#allocation8 + $0xa0] sm:$0xff] %v1274_v17  ;;  %1107 = vmatmul.f32.gmra.mxu2 %v727_v16  ;;  %1220 = vmatmul.f32.gmra.mxu3 %v727_v16 }
 0x1db   :  { %1403 = vst [vmem:[#allocation8 + $0xa8] sm:$0xff] %v1275_v50 }
 0x1dd   :  { %v1060_v57 = vpop.f32.mrf.mxu2  ;;  %v1173_v19 = vpop.f32.mrf.mxu3 }
 0x1de   :  { %v1276_v21 = vmax.f32 %v1060_v57, 0.0  ;;  %v1277_v22 = vmax.f32 %v1173_v19, 0.0  ;;  %v837_v25 = vpop.f32.mrf.mxu0  ;;  %v950_v26 = vpop.f32.mrf.mxu1  ;;  %v734_v19 = vmax.f32 %v1753_v60, 0.0 }
 0x1df   :  { %v1278_v27 = vmax.f32 %v837_v25, 0.0  ;;  %v1279_v61 = vmax.f32 %v950_v26, 0.0 }
 0x1e0   :  { %1404 = vst [vmem:[#allocation8 + $0xb0] sm:$0xff] %v1276_v21 }
 0x1e1   :  { %1405 = vst [vmem:[#allocation8 + $0xb8] sm:$0xff] %v1277_v22  ;;  %884 = vmatmul.f32.gmra.mxu0 %v728_v38  ;;  %997 = vmatmul.f32.gmra.mxu1 %v728_v38 }
 0x1e2   :  { %1406 = vst [vmem:[#allocation8 + $0xc0] sm:$0xff] %v1278_v27  ;;  %1110 = vmatmul.f32.gmra.mxu2 %v728_v38  ;;  %1223 = vmatmul.f32.gmra.mxu3 %v728_v38 }
 0x1e3   :  { %1407 = vst [vmem:[#allocation8 + $0xc8] sm:$0xff] %v1279_v61 }
 0x1e5   :  { %v1063_v4 = vpop.f32.mrf.mxu2  ;;  %v1176_v29 = vpop.f32.mrf.mxu3 }
 0x1e6   :  { %v1280_v30 = vmax.f32 %v1063_v4, 0.0  ;;  %v1281_v34 = vmax.f32 %v1176_v29, 0.0  ;;  %v840_v35 = vpop.f32.mrf.mxu0  ;;  %v953_v52 = vpop.f32.mrf.mxu1  ;;  %v735_v4 = vmax.f32 %v1756_v10, 0.0 }
 0x1e7   :  { %v1282_v37 = vmax.f32 %v840_v35, 0.0  ;;  %v1283_v6 = vmax.f32 %v953_v52, 0.0 }
 0x1e8   :  { %1408 = vst [vmem:[#allocation8 + $0xd0] sm:$0xff] %v1280_v30 }
 0x1e9   :  { %1409 = vst [vmem:[#allocation8 + $0xd8] sm:$0xff] %v1281_v34  ;;  %887 = vmatmul.f32.gmra.mxu0 %v729_v36  ;;  %1000 = vmatmul.f32.gmra.mxu1 %v729_v36 }
 0x1ea   :  { %1410 = vst [vmem:[#allocation8 + $0xe0] sm:$0xff] %v1282_v37  ;;  %1113 = vmatmul.f32.gmra.mxu2 %v729_v36  ;;  %1226 = vmatmul.f32.gmra.mxu3 %v729_v36 }
 0x1eb   :  { %1411 = vst [vmem:[#allocation8 + $0xe8] sm:$0xff] %v1283_v6  ;;  %v736_v6 = vmax.f32 %v1759_v24, 0.0 }
 0x1ed   :  { %v1066_v14 = vpop.f32.mrf.mxu2  ;;  %v1179_v39 = vpop.f32.mrf.mxu3 }
 0x1ee   :  { %v1284_v40 = vmax.f32 %v1066_v14, 0.0  ;;  %v1285_v42 = vmax.f32 %v1179_v39, 0.0  ;;  %v843_v43 = vpop.f32.mrf.mxu0  ;;  %v956_v3 = vpop.f32.mrf.mxu1 }
 0x1ef   :  { %v1286_v47 = vmax.f32 %v843_v43, 0.0  ;;  %v1287_v58 = vmax.f32 %v956_v3, 0.0 }
 0x1f0   :  { %1412 = vst [vmem:[#allocation8 + $0xf0] sm:$0xff] %v1284_v40 }
 0x1f1   :  { %1413 = vst [vmem:[#allocation8 + $0xf8] sm:$0xff] %v1285_v42  ;;  %890 = vmatmul.f32.gmra.mxu0 %v730_v45  ;;  %1003 = vmatmul.f32.gmra.mxu1 %v730_v45 }
 0x1f2   :  { %1414 = vst [vmem:[#allocation8 + $0x100] sm:$0xff] %v1286_v47  ;;  %1116 = vmatmul.f32.gmra.mxu2 %v730_v45  ;;  %1229 = vmatmul.f32.gmra.mxu3 %v730_v45  ;;  %v737_v47 = vmax.f32 %v1762_v28, 0.0 }
 0x1f3   :  { %1415 = vst [vmem:[#allocation8 + $0x108] sm:$0xff] %v1287_v58 }
 0x1f5   :  { %v1069_v48 = vpop.f32.mrf.mxu2  ;;  %v1182_v23 = vpop.f32.mrf.mxu3 }
 0x1f6   :  { %v1288_v49 = vmax.f32 %v1069_v48, 0.0  ;;  %v1289_v51 = vmax.f32 %v1182_v23, 0.0  ;;  %v846_v53 = vpop.f32.mrf.mxu0  ;;  %v959_v18 = vpop.f32.mrf.mxu1 }
 0x1f7   :  { %v1290_v55 = vmax.f32 %v846_v53, 0.0  ;;  %v1291_v7 = vmax.f32 %v959_v18, 0.0 }
 0x1f8   :  { %1416 = vst [vmem:[#allocation8 + $0x110] sm:$0xff] %v1288_v49 }
 0x1f9   :  { %1417 = vst [vmem:[#allocation8 + $0x118] sm:$0xff] %v1289_v51  ;;  %893 = vmatmul.f32.gmra.mxu0 %v731_v54  ;;  %1006 = vmatmul.f32.gmra.mxu1 %v731_v54 }
 0x1fa   :  { %1418 = vst [vmem:[#allocation8 + $0x120] sm:$0xff] %v1290_v55  ;;  %1119 = vmatmul.f32.gmra.mxu2 %v731_v54  ;;  %1232 = vmatmul.f32.gmra.mxu3 %v731_v54 }
 0x1fb   :  { %1419 = vst [vmem:[#allocation8 + $0x128] sm:$0xff] %v1291_v7 }
 0x1fd   :  { %v1072_v56 = vpop.f32.mrf.mxu2  ;;  %v1185_v59 = vpop.f32.mrf.mxu3 }
 0x1fe   :  { %v1292_v32 = vmax.f32 %v1072_v56, 0.0  ;;  %v1293_v62 = vmax.f32 %v1185_v59, 0.0  ;;  %v849_v63 = vpop.f32.mrf.mxu0  ;;  %v962_v31 = vpop.f32.mrf.mxu1 }
 0x1ff   :  { %v1294_v1 = vmax.f32 %v849_v63, 0.0  ;;  %v1295_v20 = vmax.f32 %v962_v31, 0.0 }
 0x200   :  { %1420 = vst [vmem:[#allocation8 + $0x130] sm:$0xff] %v1292_v32 }
 0x201   :  { %1421 = vst [vmem:[#allocation8 + $0x138] sm:$0xff] %v1293_v62  ;;  %896 = vmatmul.f32.gmra.mxu0 %v732_v0  ;;  %1009 = vmatmul.f32.gmra.mxu1 %v732_v0 }
 0x202   :  { %1422 = vst [vmem:[#allocation8 + $0x140] sm:$0xff] %v1294_v1  ;;  %1122 = vmatmul.f32.gmra.mxu2 %v732_v0  ;;  %1235 = vmatmul.f32.gmra.mxu3 %v732_v0 }
 0x203   :  { %1423 = vst [vmem:[#allocation8 + $0x148] sm:$0xff] %v1295_v20 }
 0x205   :  { %v1075_v2 = vpop.f32.mrf.mxu2  ;;  %v1188_v5 = vpop.f32.mrf.mxu3 }
 0x206   :  { %v1296_v8 = vmax.f32 %v1075_v2, 0.0  ;;  %v1297_v41 = vmax.f32 %v1188_v5, 0.0  ;;  %v852_v9 = vpop.f32.mrf.mxu0  ;;  %v965_v44 = vpop.f32.mrf.mxu1 }
 0x207   :  { %v1298_v12 = vmax.f32 %v852_v9, 0.0  ;;  %v1299_v33 = vmax.f32 %v965_v44, 0.0 }
 0x208   :  { %1424 = vst [vmem:[#allocation8 + $0x150] sm:$0xff] %v1296_v8 }
 0x209   :  { %1425 = vst [vmem:[#allocation8 + $0x158] sm:$0xff] %v1297_v41  ;;  %899 = vmatmul.f32.gmra.mxu0 %v733_v11  ;;  %1012 = vmatmul.f32.gmra.mxu1 %v733_v11 }
 0x20a   :  { %1426 = vst [vmem:[#allocation8 + $0x160] sm:$0xff] %v1298_v12  ;;  %1125 = vmatmul.f32.gmra.mxu2 %v733_v11  ;;  %1238 = vmatmul.f32.gmra.mxu3 %v733_v11 }
 0x20b   :  { %1427 = vst [vmem:[#allocation8 + $0x168] sm:$0xff] %v1299_v33 }
 0x20d   :  { %v1078_v13 = vpop.f32.mrf.mxu2  ;;  %v1191_v15 = vpop.f32.mrf.mxu3 }
 0x20e   :  { %v1300_v16 = vmax.f32 %v1078_v13, 0.0  ;;  %v1301_v17 = vmax.f32 %v1191_v15, 0.0  ;;  %v855_v50 = vpop.f32.mrf.mxu0  ;;  %v968_v57 = vpop.f32.mrf.mxu1 }
 0x20f   :  { %v1302_v21 = vmax.f32 %v855_v50, 0.0  ;;  %v1303_v46 = vmax.f32 %v968_v57, 0.0 }
 0x210   :  { %1428 = vst [vmem:[#allocation8 + $0x170] sm:$0xff] %v1300_v16 }
 0x211   :  { %1429 = vst [vmem:[#allocation8 + $0x178] sm:$0xff] %v1301_v17  ;;  %902 = vmatmul.f32.gmra.mxu0 %v734_v19  ;;  %1015 = vmatmul.f32.gmra.mxu1 %v734_v19 }
 0x212   :  { %1430 = vst [vmem:[#allocation8 + $0x180] sm:$0xff] %v1302_v21  ;;  %1128 = vmatmul.f32.gmra.mxu2 %v734_v19  ;;  %1241 = vmatmul.f32.gmra.mxu3 %v734_v19 }
 0x213   :  { %1431 = vst [vmem:[#allocation8 + $0x188] sm:$0xff] %v1303_v46 }
 0x215   :  { %v1081_v22 = vpop.f32.mrf.mxu2  ;;  %v1194_v25 = vpop.f32.mrf.mxu3 }
 0x216   :  { %v1304_v26 = vmax.f32 %v1081_v22, 0.0  ;;  %v1305_v38 = vmax.f32 %v1194_v25, 0.0  ;;  %v858_v27 = vpop.f32.mrf.mxu0  ;;  %v971_v61 = vpop.f32.mrf.mxu1 }
 0x217   :  { %v1306_v29 = vmax.f32 %v858_v27, 0.0  ;;  %v1307_v60 = vmax.f32 %v971_v61, 0.0 }
 0x218   :  { %1432 = vst [vmem:[#allocation8 + $0x190] sm:$0xff] %v1304_v26 }
 0x219   :  { %1433 = vst [vmem:[#allocation8 + $0x198] sm:$0xff] %v1305_v38  ;;  %905 = vmatmul.f32.gmra.mxu0 %v735_v4  ;;  %1018 = vmatmul.f32.gmra.mxu1 %v735_v4 }
 0x21a   :  { %1434 = vst [vmem:[#allocation8 + $0x1a0] sm:$0xff] %v1306_v29  ;;  %1131 = vmatmul.f32.gmra.mxu2 %v735_v4  ;;  %1244 = vmatmul.f32.gmra.mxu3 %v735_v4 }
 0x21b   :  { %1435 = vst [vmem:[#allocation8 + $0x1a8] sm:$0xff] %v1307_v60 }
 0x21d   :  { %v1084_v30 = vpop.f32.mrf.mxu2  ;;  %v1197_v34 = vpop.f32.mrf.mxu3 }
 0x21e   :  { %v1308_v35 = vmax.f32 %v1084_v30, 0.0  ;;  %v1309_v52 = vmax.f32 %v1197_v34, 0.0  ;;  %v861_v36 = vpop.f32.mrf.mxu0  ;;  %v974_v37 = vpop.f32.mrf.mxu1 }
 0x21f   :  { %v1310_v14 = vmax.f32 %v861_v36, 0.0  ;;  %v1311_v10 = vmax.f32 %v974_v37, 0.0 }
 0x220   :  { %1436 = vst [vmem:[#allocation8 + $0x1b0] sm:$0xff] %v1308_v35 }
 0x221   :  { %1437 = vst [vmem:[#allocation8 + $0x1b8] sm:$0xff] %v1309_v52  ;;  %908 = vmatmul.f32.gmra.mxu0 %v736_v6  ;;  %1021 = vmatmul.f32.gmra.mxu1 %v736_v6 }
 0x222   :  { %1438 = vst [vmem:[#allocation8 + $0x1c0] sm:$0xff] %v1310_v14  ;;  %1134 = vmatmul.f32.gmra.mxu2 %v736_v6  ;;  %1247 = vmatmul.f32.gmra.mxu3 %v736_v6 }
 0x223   :  { %1439 = vst [vmem:[#allocation8 + $0x1c8] sm:$0xff] %v1311_v10 }
 0x225   :  { %v1087_v39 = vpop.f32.mrf.mxu2  ;;  %v1200_v40 = vpop.f32.mrf.mxu3 }
 0x226   :  { %v1312_v42 = vmax.f32 %v1087_v39, 0.0  ;;  %v1313_v43 = vmax.f32 %v1200_v40, 0.0  ;;  %v864_v3 = vpop.f32.mrf.mxu0  ;;  %v977_v45 = vpop.f32.mrf.mxu1 }
 0x227   :  { %v1314_v58 = vmax.f32 %v864_v3, 0.0  ;;  %v1315_v24 = vmax.f32 %v977_v45, 0.0 }
 0x228   :  { %1440 = vst [vmem:[#allocation8 + $0x1d0] sm:$0xff] %v1312_v42 }
 0x229   :  { %1441 = vst [vmem:[#allocation8 + $0x1d8] sm:$0xff] %v1313_v43  ;;  %911 = vmatmul.f32.gmra.mxu0 %v737_v47  ;;  %1024 = vmatmul.f32.gmra.mxu1 %v737_v47 }
 0x22a   :  { %1442 = vst [vmem:[#allocation8 + $0x1e0] sm:$0xff] %v1314_v58  ;;  %1137 = vmatmul.f32.gmra.mxu2 %v737_v47  ;;  %1250 = vmatmul.f32.gmra.mxu3 %v737_v47 }
 0x22b   :  { %1443 = vst [vmem:[#allocation8 + $0x1e8] sm:$0xff] %v1315_v24 }
 0x22d   :  { %v1090_v48 = vpop.f32.mrf.mxu2  ;;  %v1203_v23 = vpop.f32.mrf.mxu3 }
 0x22e   :  { %v1316_v49 = vmax.f32 %v1090_v48, 0.0  ;;  %v1317_v51 = vmax.f32 %v1203_v23, 0.0  ;;  %v867_v53 = vpop.f32.mrf.mxu0  ;;  %v980_v18 = vpop.f32.mrf.mxu1 }
 0x22f   :  { %v1318_v54 = vmax.f32 %v867_v53, 0.0  ;;  %v1319_v55 = vmax.f32 %v980_v18, 0.0 }
 0x230   :  { %1444 = vst [vmem:[#allocation8 + $0x1f0] sm:$0xff] %v1316_v49 }
 0x231   :  { %1445 = vst [vmem:[#allocation8 + $0x1f8] sm:$0xff] %v1317_v51 }
 0x232   :  { %1446 = vst [vmem:[#allocation8 + $0x200] sm:$0xff] %v1318_v54 }
 0x233   :  { %1447 = vst [vmem:[#allocation8 + $0x208] sm:$0xff] %v1319_v55 }
 0x235   :  { %v1093_v28 = vpop.f32.mrf.mxu2  ;;  %v1206_v7 = vpop.f32.mrf.mxu3 }
 0x236   :  { %v1320_v56 = vmax.f32 %v1093_v28, 0.0  ;;  %v1321_v59 = vmax.f32 %v1206_v7, 0.0  ;;  %v870_v32 = vpop.f32.mrf.mxu0  ;;  %v983_v62 = vpop.f32.mrf.mxu1 }
 0x237   :  { %v1322_v63 = vmax.f32 %v870_v32, 0.0  ;;  %v1323_v31 = vmax.f32 %v983_v62, 0.0 }
 0x238   :  { %1448 = vst [vmem:[#allocation8 + $0x210] sm:$0xff] %v1320_v56 }
 0x239   :  { %1449 = vst [vmem:[#allocation8 + $0x218] sm:$0xff] %v1321_v59 }
 0x23a   :  { %1450 = vst [vmem:[#allocation8 + $0x220] sm:$0xff] %v1322_v63 }
 0x23b   :  { %1451 = vst [vmem:[#allocation8 + $0x228] sm:$0xff] %v1323_v31 }
 0x23d   :  { %v1096_v0 = vpop.f32.mrf.mxu2  ;;  %v1209_v1 = vpop.f32.mrf.mxu3 }
 0x23e   :  { %v1324_v20 = vmax.f32 %v1096_v0, 0.0  ;;  %v1325_v2 = vmax.f32 %v1209_v1, 0.0  ;;  %v873_v5 = vpop.f32.mrf.mxu0  ;;  %v986_v8 = vpop.f32.mrf.mxu1 }
 0x23f   :  { %v1326_v41 = vmax.f32 %v873_v5, 0.0  ;;  %v1327_v9 = vmax.f32 %v986_v8, 0.0 }
 0x240   :  { %1452 = vst [vmem:[#allocation8 + $0x230] sm:$0xff] %v1324_v20 }
 0x241   :  { %1453 = vst [vmem:[#allocation8 + $0x238] sm:$0xff] %v1325_v2 }
 0x242   :  { %1454 = vst [vmem:[#allocation8 + $0x240] sm:$0xff] %v1326_v41 }
 0x243   :  { %1455 = vst [vmem:[#allocation8 + $0x248] sm:$0xff] %v1327_v9 }
 0x245   :  { %v1099_v44 = vpop.f32.mrf.mxu2  ;;  %v1212_v11 = vpop.f32.mrf.mxu3 }
 0x246   :  { %v1328_v12 = vmax.f32 %v1099_v44, 0.0  ;;  %v1329_v33 = vmax.f32 %v1212_v11, 0.0  ;;  %v876_v13 = vpop.f32.mrf.mxu0  ;;  %v989_v15 = vpop.f32.mrf.mxu1 }
 0x247   :  { %v1330_v16 = vmax.f32 %v876_v13, 0.0  ;;  %v1331_v17 = vmax.f32 %v989_v15, 0.0 }
 0x248   :  { %1456 = vst [vmem:[#allocation8 + $0x250] sm:$0xff] %v1328_v12 }
 0x249   :  { %1457 = vst [vmem:[#allocation8 + $0x258] sm:$0xff] %v1329_v33 }
 0x24a   :  { %1458 = vst [vmem:[#allocation8 + $0x260] sm:$0xff] %v1330_v16 }
 0x24b   :  { %1459 = vst [vmem:[#allocation8 + $0x268] sm:$0xff] %v1331_v17 }
 0x24d   :  { %v1102_v50 = vpop.f32.mrf.mxu2  ;;  %v1215_v57 = vpop.f32.mrf.mxu3 }
 0x24e   :  { %v1332_v19 = vmax.f32 %v1102_v50, 0.0  ;;  %v1333_v21 = vmax.f32 %v1215_v57, 0.0  ;;  %v879_v46 = vpop.f32.mrf.mxu0  ;;  %v992_v22 = vpop.f32.mrf.mxu1 }
 0x24f   :  { %v1334_v25 = vmax.f32 %v879_v46, 0.0  ;;  %v1335_v26 = vmax.f32 %v992_v22, 0.0 }
 0x250   :  { %1460 = vst [vmem:[#allocation8 + $0x270] sm:$0xff] %v1332_v19 }
 0x251   :  { %1461 = vst [vmem:[#allocation8 + $0x278] sm:$0xff] %v1333_v21 }
 0x252   :  { %1462 = vst [vmem:[#allocation8 + $0x280] sm:$0xff] %v1334_v25 }
 0x253   :  { %1463 = vst [vmem:[#allocation8 + $0x288] sm:$0xff] %v1335_v26 }
 0x255   :  { %v1105_v38 = vpop.f32.mrf.mxu2  ;;  %v1218_v27 = vpop.f32.mrf.mxu3 }
 0x256   :  { %v1336_v61 = vmax.f32 %v1105_v38, 0.0  ;;  %v1337_v4 = vmax.f32 %v1218_v27, 0.0  ;;  %v882_v29 = vpop.f32.mrf.mxu0  ;;  %v995_v60 = vpop.f32.mrf.mxu1 }
 0x257   :  { %v1338_v30 = vmax.f32 %v882_v29, 0.0  ;;  %v1339_v34 = vmax.f32 %v995_v60, 0.0 }
 0x258   :  { %1464 = vst [vmem:[#allocation8 + $0x290] sm:$0xff] %v1336_v61 }
 0x259   :  { %1465 = vst [vmem:[#allocation8 + $0x298] sm:$0xff] %v1337_v4 }
 0x25a   :  { %1466 = vst [vmem:[#allocation8 + $0x2a0] sm:$0xff] %v1338_v30 }
 0x25b   :  { %1467 = vst [vmem:[#allocation8 + $0x2a8] sm:$0xff] %v1339_v34 }
 0x25d   :  { %v1108_v35 = vpop.f32.mrf.mxu2  ;;  %v1221_v52 = vpop.f32.mrf.mxu3 }
 0x25e   :  { %v1340_v36 = vmax.f32 %v1108_v35, 0.0  ;;  %v1341_v37 = vmax.f32 %v1221_v52, 0.0  ;;  %v885_v6 = vpop.f32.mrf.mxu0  ;;  %v998_v14 = vpop.f32.mrf.mxu1 }
 0x25f   :  { %v1342_v10 = vmax.f32 %v885_v6, 0.0  ;;  %v1343_v39 = vmax.f32 %v998_v14, 0.0 }
 0x260   :  { %1468 = vst [vmem:[#allocation8 + $0x2b0] sm:$0xff] %v1340_v36 }
 0x261   :  { %1469 = vst [vmem:[#allocation8 + $0x2b8] sm:$0xff] %v1341_v37 }
 0x262   :  { %1470 = vst [vmem:[#allocation8 + $0x2c0] sm:$0xff] %v1342_v10 }
 0x263   :  { %1471 = vst [vmem:[#allocation8 + $0x2c8] sm:$0xff] %v1343_v39 }
 0x265   :  { %v1111_v40 = vpop.f32.mrf.mxu2  ;;  %v1224_v42 = vpop.f32.mrf.mxu3 }
 0x266   :  { %v1344_v43 = vmax.f32 %v1111_v40, 0.0  ;;  %v1345_v3 = vmax.f32 %v1224_v42, 0.0  ;;  %v888_v45 = vpop.f32.mrf.mxu0  ;;  %v1001_v47 = vpop.f32.mrf.mxu1 }
 0x267   :  { %v1346_v58 = vmax.f32 %v888_v45, 0.0  ;;  %v1347_v24 = vmax.f32 %v1001_v47, 0.0 }
 0x268   :  { %1472 = vst [vmem:[#allocation8 + $0x2d0] sm:$0xff] %v1344_v43 }
 0x269   :  { %1473 = vst [vmem:[#allocation8 + $0x2d8] sm:$0xff] %v1345_v3 }
 0x26a   :  { %1474 = vst [vmem:[#allocation8 + $0x2e0] sm:$0xff] %v1346_v58 }
 0x26b   :  { %1475 = vst [vmem:[#allocation8 + $0x2e8] sm:$0xff] %v1347_v24 }
 0x26d   :  { %v1114_v48 = vpop.f32.mrf.mxu2  ;;  %v1227_v23 = vpop.f32.mrf.mxu3 }
 0x26e   :  { %v1348_v49 = vmax.f32 %v1114_v48, 0.0  ;;  %v1349_v51 = vmax.f32 %v1227_v23, 0.0  ;;  %v891_v53 = vpop.f32.mrf.mxu0  ;;  %v1004_v18 = vpop.f32.mrf.mxu1 }
 0x26f   :  { %v1350_v54 = vmax.f32 %v891_v53, 0.0  ;;  %v1351_v55 = vmax.f32 %v1004_v18, 0.0 }
 0x270   :  { %1476 = vst [vmem:[#allocation8 + $0x2f0] sm:$0xff] %v1348_v49 }
 0x271   :  { %1477 = vst [vmem:[#allocation8 + $0x2f8] sm:$0xff] %v1349_v51 }
 0x272   :  { %1478 = vst [vmem:[#allocation8 + $0x300] sm:$0xff] %v1350_v54 }
 0x273   :  { %1479 = vst [vmem:[#allocation8 + $0x308] sm:$0xff] %v1351_v55 }
 0x275   :  { %v1117_v28 = vpop.f32.mrf.mxu2  ;;  %v1230_v7 = vpop.f32.mrf.mxu3 }
 0x276   :  { %v1352_v56 = vmax.f32 %v1117_v28, 0.0  ;;  %v1353_v59 = vmax.f32 %v1230_v7, 0.0  ;;  %v894_v32 = vpop.f32.mrf.mxu0  ;;  %v1007_v62 = vpop.f32.mrf.mxu1 }
 0x277   :  { %v1354_v63 = vmax.f32 %v894_v32, 0.0  ;;  %v1355_v31 = vmax.f32 %v1007_v62, 0.0 }
 0x278   :  { %1480 = vst [vmem:[#allocation8 + $0x310] sm:$0xff] %v1352_v56 }
 0x279   :  { %1481 = vst [vmem:[#allocation8 + $0x318] sm:$0xff] %v1353_v59 }
 0x27a   :  { %1482 = vst [vmem:[#allocation8 + $0x320] sm:$0xff] %v1354_v63 }
 0x27b   :  { %1483 = vst [vmem:[#allocation8 + $0x328] sm:$0xff] %v1355_v31 }
 0x27d   :  { %v1120_v0 = vpop.f32.mrf.mxu2  ;;  %v1233_v1 = vpop.f32.mrf.mxu3 }
 0x27e   :  { %v1356_v20 = vmax.f32 %v1120_v0, 0.0  ;;  %v1357_v2 = vmax.f32 %v1233_v1, 0.0  ;;  %v897_v5 = vpop.f32.mrf.mxu0  ;;  %v1010_v8 = vpop.f32.mrf.mxu1 }
 0x27f   :  { %v1358_v41 = vmax.f32 %v897_v5, 0.0  ;;  %v1359_v9 = vmax.f32 %v1010_v8, 0.0 }
 0x280   :  { %1484 = vst [vmem:[#allocation8 + $0x330] sm:$0xff] %v1356_v20 }
 0x281   :  { %1485 = vst [vmem:[#allocation8 + $0x338] sm:$0xff] %v1357_v2 }
 0x282   :  { %1486 = vst [vmem:[#allocation8 + $0x340] sm:$0xff] %v1358_v41 }
 0x283   :  { %1487 = vst [vmem:[#allocation8 + $0x348] sm:$0xff] %v1359_v9 }
 0x285   :  { %v1123_v44 = vpop.f32.mrf.mxu2  ;;  %v1236_v11 = vpop.f32.mrf.mxu3 }
 0x286   :  { %v1360_v12 = vmax.f32 %v1123_v44, 0.0  ;;  %v1361_v33 = vmax.f32 %v1236_v11, 0.0  ;;  %v900_v13 = vpop.f32.mrf.mxu0  ;;  %v1013_v15 = vpop.f32.mrf.mxu1 }
 0x287   :  { %v1362_v16 = vmax.f32 %v900_v13, 0.0  ;;  %v1363_v17 = vmax.f32 %v1013_v15, 0.0 }
 0x288   :  { %1488 = vst [vmem:[#allocation8 + $0x350] sm:$0xff] %v1360_v12 }
 0x289   :  { %1489 = vst [vmem:[#allocation8 + $0x358] sm:$0xff] %v1361_v33 }
 0x28a   :  { %1490 = vst [vmem:[#allocation8 + $0x360] sm:$0xff] %v1362_v16 }
 0x28b   :  { %1491 = vst [vmem:[#allocation8 + $0x368] sm:$0xff] %v1363_v17 }
 0x28d   :  { %v1126_v50 = vpop.f32.mrf.mxu2  ;;  %v1239_v57 = vpop.f32.mrf.mxu3 }
 0x28e   :  { %v1364_v19 = vmax.f32 %v1126_v50, 0.0  ;;  %v1365_v21 = vmax.f32 %v1239_v57, 0.0  ;;  %v903_v46 = vpop.f32.mrf.mxu0  ;;  %v1016_v22 = vpop.f32.mrf.mxu1 }
 0x28f   :  { %v1366_v25 = vmax.f32 %v903_v46, 0.0  ;;  %v1367_v26 = vmax.f32 %v1016_v22, 0.0 }
 0x290   :  { %1492 = vst [vmem:[#allocation8 + $0x370] sm:$0xff] %v1364_v19 }
 0x291   :  { %1493 = vst [vmem:[#allocation8 + $0x378] sm:$0xff] %v1365_v21 }
 0x292   :  { %1494 = vst [vmem:[#allocation8 + $0x380] sm:$0xff] %v1366_v25 }
 0x293   :  { %1495 = vst [vmem:[#allocation8 + $0x388] sm:$0xff] %v1367_v26 }
 0x295   :  { %v1129_v38 = vpop.f32.mrf.mxu2  ;;  %v1242_v27 = vpop.f32.mrf.mxu3 }
 0x296   :  { %v1368_v61 = vmax.f32 %v1129_v38, 0.0  ;;  %v1369_v4 = vmax.f32 %v1242_v27, 0.0  ;;  %v906_v29 = vpop.f32.mrf.mxu0  ;;  %v1019_v60 = vpop.f32.mrf.mxu1 }
 0x297   :  { %v1370_v30 = vmax.f32 %v906_v29, 0.0  ;;  %v1371_v34 = vmax.f32 %v1019_v60, 0.0 }
 0x298   :  { %1496 = vst [vmem:[#allocation8 + $0x390] sm:$0xff] %v1368_v61 }
 0x299   :  { %1497 = vst [vmem:[#allocation8 + $0x398] sm:$0xff] %v1369_v4 }
 0x29a   :  { %1498 = vst [vmem:[#allocation8 + $0x3a0] sm:$0xff] %v1370_v30 }
 0x29b   :  { %1499 = vst [vmem:[#allocation8 + $0x3a8] sm:$0xff] %v1371_v34 }
 0x29d   :  { %v1132_v35 = vpop.f32.mrf.mxu2  ;;  %v1245_v52 = vpop.f32.mrf.mxu3 }
 0x29e   :  { %v1372_v36 = vmax.f32 %v1132_v35, 0.0  ;;  %v1373_v37 = vmax.f32 %v1245_v52, 0.0  ;;  %v909_v6 = vpop.f32.mrf.mxu0  ;;  %v1022_v14 = vpop.f32.mrf.mxu1 }
 0x29f   :  { %v1374_v10 = vmax.f32 %v909_v6, 0.0  ;;  %v1375_v39 = vmax.f32 %v1022_v14, 0.0 }
 0x2a0   :  { %1500 = vst [vmem:[#allocation8 + $0x3b0] sm:$0xff] %v1372_v36 }
 0x2a1   :  { %1501 = vst [vmem:[#allocation8 + $0x3b8] sm:$0xff] %v1373_v37 }
 0x2a2   :  { %1502 = vst [vmem:[#allocation8 + $0x3c0] sm:$0xff] %v1374_v10 }
 0x2a3   :  { %1503 = vst [vmem:[#allocation8 + $0x3c8] sm:$0xff] %v1375_v39 }
 0x2a5   :  { %v1135_v40 = vpop.f32.mrf.mxu2  ;;  %v1248_v42 = vpop.f32.mrf.mxu3 }
 0x2a6   :  { %v1376_v43 = vmax.f32 %v1135_v40, 0.0  ;;  %v1377_v3 = vmax.f32 %v1248_v42, 0.0  ;;  %v912_v45 = vpop.f32.mrf.mxu0  ;;  %v1025_v47 = vpop.f32.mrf.mxu1 }
 0x2a7   :  { %v1378_v58 = vmax.f32 %v912_v45, 0.0  ;;  %v1379_v24 = vmax.f32 %v1025_v47, 0.0 }
 0x2a8   :  { %1504 = vst [vmem:[#allocation8 + $0x3d0] sm:$0xff] %v1376_v43 }
 0x2a9   :  { %1505 = vst [vmem:[#allocation8 + $0x3d8] sm:$0xff] %v1377_v3 }
 0x2aa   :  { %1506 = vst [vmem:[#allocation8 + $0x3e0] sm:$0xff] %v1378_v58 }
 0x2ab   :  { %1507 = vst [vmem:[#allocation8 + $0x3e8] sm:$0xff] %v1379_v24 }
 0x2ad   :  { %v1138_v48 = vpop.f32.mrf.mxu2  ;;  %v1251_v23 = vpop.f32.mrf.mxu3 }
 0x2ae   :  { %v1380_v49 = vmax.f32 %v1138_v48, 0.0  ;;  %v1381_v51 = vmax.f32 %v1251_v23, 0.0 }
 0x2b0   :  { %1508 = vst [vmem:[#allocation8 + $0x3f0] sm:$0xff] %v1380_v49 }
 0x2b1   :  { %1509 = vst [vmem:[#allocation8 + $0x3f8] sm:$0xff] %v1381_v51 }
 0x2b2   :  { %1522 = dma.vmem_to_hbm [thread:$0]  %s1515_s29, 16384, %s1517_s5, [#allocation4], %s1644_s24, %s1644_s24, %s1645_s25  }
 0x2b3   :  { %1638 = dma.done.wait [#allocation4], 16384  }
 0x2b4   :  { %1639 = vsyncadd [#allocation4], 4294950912 }
 0x2b5   :  { %1527 = vsyncpa [#allocation3], 1 }
 0x2b6   :  { %1528 = vsyncpa [#allocation6], 1 }
 0x2b7   :  { %1529 = vsyncpa [#allocation4], 1 }

</bundles_post_ra>
